<compile_context>
chip_gen: v5e
topology: v5e:2x2
jax: 0.10.0
libtpu: 0.0.40
codegen_flags: <defaults>
</compile_context>

<pallas_src>
import functools

import jax
import jax.numpy as jnp
from jax.experimental import pallas as pl
from jax.experimental.pallas import tpu as pltpu


# ---------------------------------------------------------------------------
# Kernel
# ---------------------------------------------------------------------------
def _stats_pool_kernel(*refs, T, Tt, t_chunk, eps, correction, xvector,
                       has_length, mask_tail):
    """Accumulate sum / sumsq over time tiles; finalize mean/std on last tile.

    refs layout:
      has_length: (blk_last_ref, len_ref, x_ref, o_ref, sum_ref[, sumsq_ref])
      else:       (x_ref, o_ref, sum_ref[, sumsq_ref])

      blk_last_ref : (nB,) int32 SMEM   last useful time-tile per batch block
      len_ref      : (Bt, 1, 1) int32   per-row valid length
      x_ref        : (Bt, Dt, Tt)       input tile (D on sublanes, T on lanes)
      o_ref        : (Bt, 2, Dt) or (Bt, 1, Dt)
      sum_ref / sumsq_ref : (Bt, Dt) f32 scratch accumulators
    """
    if has_length:
        blk_last_ref, len_ref, x_ref, o_ref, *scratch = refs
    else:
        x_ref, o_ref, *scratch = refs
        blk_last_ref = len_ref = None
    sum_ref = scratch[0]
    sumsq_ref = scratch[1] if xvector else None

    t = pl.program_id(2)
    Bt = sum_ref.shape[0]

    # ---- init accumulators on first time tile -----------------------------
    @pl.when(t == 0)
    def _init():
        sum_ref[...] = jnp.zeros_like(sum_ref)
        if xvector:
            sumsq_ref[...] = jnp.zeros_like(sumsq_ref)

    # ---- accumulate this tile's moments ------------------------------------
    def _accumulate():
        need_mask = has_length or mask_tail
        if has_length:
            lvec = len_ref[...].astype(jnp.int32)          # (Bt, 1, 1)
        # Static chunking over the lane (time) axis bounds the f32 upcast /
        # mask / square temporaries independent of the streamed tile size.
        for c0 in range(0, Tt, t_chunk):
            clen = min(t_chunk, Tt - c0)
            xs = x_ref[:, :, c0:c0 + clen].astype(jnp.float32)  # (Bt, Dt, clen)
            if need_mask:
                t_idx = (jax.lax.broadcasted_iota(jnp.int32, (Bt, 1, clen), 2)
                         + (t * Tt + c0))
                bound = lvec if has_length else T
                xs = jnp.where(t_idx < bound, xs, 0.0)
            sum_ref[...] += jnp.sum(xs, axis=-1)               # (Bt, Dt)
            if xvector:
                sumsq_ref[...] += jnp.sum(xs * xs, axis=-1)    # (Bt, Dt)

    if has_length:
        # Skip compute on tiles entirely past this batch block's max length
        # (the input index_map also clamps the block index so the DMA for
        # those tiles is skipped).
        blk_last = blk_last_ref[pl.program_id(0)]

        @pl.when(t <= blk_last)
        def _():
            _accumulate()
    else:
        _accumulate()

    # ---- finalize on last time tile ----------------------------------------
    @pl.when(t == pl.num_programs(2) - 1)
    def _finalize():
        s = sum_ref[...]                                       # (Bt, Dt) f32
        if has_length:
            n = len_ref[...][:, :, 0].astype(jnp.float32)      # (Bt, 1)
        else:
            n = float(T)
        mean = s / n
        if xvector:
            # sum((x - mean)^2) == sumsq - sum * mean  (single-pass moments;
            # can lose precision when |mean| >> std -- see header note).
            var = (sumsq_ref[...] - s * mean) / (n - correction)
            if has_length:
                # torch: .clamp(min=eps).sqrt()  -> clamp BEFORE sqrt
                std = jnp.sqrt(jnp.maximum(var, eps))
            else:
                # torch: std(...).clamp(min=eps) -> clamp AFTER sqrt
                std = jnp.maximum(jnp.sqrt(jnp.maximum(var, 0.0)), eps)
            # Single lane-dense store of the whole (Bt, 2, Dt) result.
            o_ref[...] = jnp.stack([mean, std], axis=1).astype(o_ref.dtype)
        else:
            o_ref[...] = mean[:, None, :].astype(o_ref.dtype)


# ---------------------------------------------------------------------------
# Block-size selection helpers
# ---------------------------------------------------------------------------
def _choose_feat_block(D):
    """Largest 128-multiple that divides D, <= 512, leaving >= 2 blocks."""
    if D % 128 != 0 or D < 256:
        return D
    hi = min(512, (D // 2) // 128 * 128)
    for cand in range(hi, 127, -128):
        if D % cand == 0:
            return cand
    return D


# ---------------------------------------------------------------------------
# Wrapper (equivalent of StatsPoolLayer.forward)
# ---------------------------------------------------------------------------
def stats_pool_layer(encoder_output, length=None, *, pool_mode="xvector",
                     eps=1e-10, unbiased=True, batch_block=8,
                     time_block=None, time_block_budget_bytes=8 * 1024 * 1024,
                     lane_chunk=None, lane_chunk_budget_bytes=2 * 1024 * 1024):
    """encoder_output: [B, D, T] (PyTorch layout, consumed directly -- no
    wrapper transpose).  Returns [B, 2D] (xvector) or [B, D] (tap)."""
    if pool_mode not in ("xvector", "tap"):
        raise ValueError(
            f"Pool mode must be one of {{'xvector','tap'}}; got '{pool_mode}'")
    B, D, T = encoder_output.shape
    xvector = pool_mode == "xvector"
    correction = 1.0 if unbiased else 0.0
    has_length = length is not None

    # ---- block sizing (native [B, D, T]: D on sublanes, T on lanes) --------
    Bt = min(B, batch_block)
    Dt = _choose_feat_block(D)
    nD = pl.cdiv(D, Dt)
    # v7x megacore: guarantee >= 2 "parallel" grid blocks when possible.
    if pl.cdiv(B, Bt) == 1 and nD == 1 and B > 1:
        Bt = pl.cdiv(B, 2)
    nB = pl.cdiv(B, Bt)

    itemsize = jnp.dtype(encoder_output.dtype).itemsize
    if time_block is not None:
        tt = int(time_block)
    else:
        tt = time_block_budget_bytes // max(1, Bt * Dt * itemsize)
    tt = max(128, (tt // 128) * 128)          # T lives on lanes -> 128-multiple
    Tt = T if tt >= T else tt
    nT = pl.cdiv(T, Tt)
    mask_tail = (Tt < T) and (T % Tt != 0)

    # In-kernel f32 chunk along the lane (time) axis.
    if lane_chunk is not None:
        tc = int(lane_chunk)
    else:
        tc = lane_chunk_budget_bytes // max(1, Bt * Dt * 4)
    tc = max(128, (tc // 128) * 128)
    tc = min(tc, Tt)
    while pl.cdiv(Tt, tc) > 16:               # bound static unroll / code size
        tc *= 2
    tc = min(tc, Tt)

    grid = (nB, nD, nT)

    kernel = functools.partial(
        _stats_pool_kernel, T=T, Tt=Tt, t_chunk=tc, eps=float(eps),
        correction=correction, xvector=xvector, has_length=has_length,
        mask_tail=mask_tail)

    out_planes = 2 if xvector else 1
    out_shape = jax.ShapeDtypeStruct((B, out_planes, D), encoder_output.dtype)

    scratch_shapes = [pltpu.VMEM((Bt, Dt), jnp.float32)]        # sum(x)
    if xvector:
        scratch_shapes.append(pltpu.VMEM((Bt, Dt), jnp.float32))  # sum(x*x)

    # VMEM accounting: double-buffered input tile + output + accumulators +
    # the f32 chunk temporaries, with headroom; capped below v7x physical.
    est = (2 * Bt * Dt * Tt * itemsize
           + 2 * Bt * out_planes * Dt * itemsize
           + len(scratch_shapes) * Bt * Dt * 4
           + 3 * Bt * Dt * tc * 4
           + (1 << 14))
    vmem_limit = int(min(56 * 1024 * 1024,
                         max(24 * 1024 * 1024, int(est * 1.5))))

    compiler_params = pltpu.CompilerParams(
        dimension_semantics=("parallel", "parallel", "arbitrary"),
        vmem_limit_bytes=vmem_limit)

    if has_length:
        lengths = jnp.asarray(length).astype(jnp.int32).reshape(B)
        pad = nB * Bt - B
        blk_max = jnp.pad(lengths, (0, pad)).reshape(nB, Bt).max(axis=1)
        # Last useful time-tile index per batch block (>= 0 even for len == 0).
        blk_last = (jnp.maximum((blk_max + (Tt - 1)) // Tt, 1) - 1
                    ).astype(jnp.int32)
        len3d = lengths.reshape(B, 1, 1)

        def x_map(b, d, t, bl):
            # Clamp the time block index past the last useful tile so Pallas
            # skips the DMA (repeated block index) for fully-padded tiles.
            return (b, d, jnp.minimum(t, bl[b]))

        grid_spec = pltpu.PrefetchScalarGridSpec(
            num_scalar_prefetch=1,
            grid=grid,
            in_specs=[
                pl.BlockSpec((Bt, 1, 1), lambda b, d, t, bl: (b, 0, 0)),
                pl.BlockSpec((Bt, Dt, Tt), x_map),
            ],
            out_specs=pl.BlockSpec((Bt, out_planes, Dt),
                                   lambda b, d, t, bl: (b, 0, d)),
            scratch_shapes=scratch_shapes)
        pooled = pl.pallas_call(
            kernel, out_shape=out_shape, grid_spec=grid_spec,
            compiler_params=compiler_params,
        )(blk_last, len3d, encoder_output)
    else:
        grid_spec = pltpu.PrefetchScalarGridSpec(
            num_scalar_prefetch=0,
            grid=grid,
            in_specs=[pl.BlockSpec((Bt, Dt, Tt), lambda b, d, t: (b, d, t))],
            out_specs=pl.BlockSpec((Bt, out_planes, Dt),
                                   lambda b, d, t: (b, 0, d)),
            scratch_shapes=scratch_shapes)
        pooled = pl.pallas_call(
            kernel, out_shape=out_shape, grid_spec=grid_spec,
            compiler_params=compiler_params,
        )(encoder_output)

    # (B, 2, D) -> (B, 2D) == torch.cat([mean, std], dim=-1);  tap: (B,1,D)->(B,D)
    return pooled.reshape(B, out_planes * D)


# ---------------------------------------------------------------------------
# Pure-JAX reference (mirrors the PyTorch forward) for verification
# ---------------------------------------------------------------------------
def stats_pool_ref(x, length=None, *, pool_mode="xvector", eps=1e-10,
                   unbiased=True):
    correction = 1 if unbiased else 0
    B, D, T = x.shape
    if length is None:
        mean = x.mean(axis=-1)
        if pool_mode == "xvector":
            var = jnp.sum((x - mean[..., None]) ** 2, axis=-1) / (T - correction)
            std = jnp.maximum(jnp.sqrt(var), eps)
            return jnp.concatenate([mean, std], axis=-1)
        return mean
    t_idx = jnp.arange(T)[None, None, :]
    valid = t_idx < length[:, None, None]
    xm = jnp.where(valid, x, 0.0)
    means = xm.sum(axis=-1) / length[:, None].astype(x.dtype)
    if pool_mode == "xvector":
        diff = jnp.where(valid, xm - means[..., None], 0.0)
        var = (diff ** 2).sum(-1) / (length[:, None].astype(x.dtype) - correction)
        std = jnp.sqrt(jnp.maximum(var, eps))
        return jnp.concatenate([means, std], axis=-1)
    return means


# ---------------------------------------------------------------------------
if __name__ == "__main__":
    key = jax.random.PRNGKey(0)
    k1, k2 = jax.random.split(key)

    # Case A/B/C: D splits into two 128-lane blocks, three time tiles with a
    # masked tail, and length-based tile skipping (max length 200 < 2*128).
    B, D, T = 3, 256, 320
    x = jax.random.normal(k1, (B, D, T), dtype=jnp.float32)
    lengths = jnp.array([200, 120, 64], dtype=jnp.int32)

    out_a = jax.block_until_ready(
        stats_pool_layer(x, lengths, pool_mode="xvector", time_block=128))
    ref_a = stats_pool_ref(x, lengths, pool_mode="xvector")

    out_b = jax.block_until_ready(
        stats_pool_layer(x, lengths, pool_mode="tap", time_block=128))
    ref_b = stats_pool_ref(x, lengths, pool_mode="tap")

    # No-length path, single time tile, multi-chunk static in-kernel reduction
    # (chunks of 128 lanes incl. a ragged 64-lane tail chunk).
    out_c = jax.block_until_ready(
        stats_pool_layer(x, pool_mode="xvector", lane_chunk=128))
    ref_c = stats_pool_ref(x, pool_mode="xvector")

    # Case D: D not a 128-multiple (no D split), batch block shrunk to 2 for
    # megacore -> exercises a partial (padded) batch block.
    B2, D2, T2 = 3, 48, 64
    x2 = jax.random.normal(k2, (B2, D2, T2), dtype=jnp.float32)
    out_d = jax.block_until_ready(stats_pool_layer(x2, pool_mode="xvector"))
    ref_d = stats_pool_ref(x2, pool_mode="xvector")

    assert out_a.shape == (B, 2 * D)
    assert out_b.shape == (B, D)
    assert out_c.shape == (B, 2 * D)
    assert out_d.shape == (B2, 2 * D2)
    assert jnp.allclose(out_a, ref_a, atol=2e-5, rtol=2e-5)
    assert jnp.allclose(out_b, ref_b, atol=2e-5, rtol=2e-5)
    assert jnp.allclose(out_c, ref_c, atol=2e-5, rtol=2e-5)
    assert jnp.allclose(out_d, ref_d, atol=2e-5, rtol=2e-5)

    print("KERNEL_OK")
</pallas_src>

<mosaic_0001>
module attributes {stable_mosaic.version = 11 : i64} {
  func.func @_stats_pool_kernel(%arg0: i32, %arg1: i32, %arg2: i32, %arg3: memref<1xi32, #tpu.memory_space<smem>>, %arg4: memref<3x1x1xi32, #tpu.memory_space<vmem>>, %arg5: memref<3x128x128xf32, #tpu.memory_space<vmem>>, %arg6: memref<3x2x128xf32, #tpu.memory_space<vmem>>, %arg7: memref<3x128xf32, #tpu.memory_space<vmem>>, %arg8: memref<3x128xf32, #tpu.memory_space<vmem>>) attributes {dimension_semantics = [#tpu.dimension_semantics<parallel>, #tpu.dimension_semantics<parallel>, #tpu.dimension_semantics<arbitrary>], iteration_bounds = array<i64: 1, 2, 3>, scalar_prefetch = 1 : i64, scratch_operands = 2 : i64, tpu.core_type = #tpu.core_type<tc>, window_params = [{transform_indices = @transform_0, window_bounds = array<i64: 3, 1, 1>}, {transform_indices = @transform_1, window_bounds = array<i64: 3, 128, 128>}, {transform_indices = @transform_2, window_bounds = array<i64: 3, 2, 128>}]} {
    %c0_i32 = arith.constant 0 : i32
    %0 = arith.cmpi eq, %arg2, %c0_i32 : i32
    %1 = arith.extui %0 : i1 to i32
    %c0_i32_0 = arith.constant 0 : i32
    %2 = arith.cmpi ne, %1, %c0_i32_0 : i32
    scf.if %2 {
      %cst = arith.constant 0.000000e+00 : f32
      %11 = vector.broadcast %cst : f32 to vector<3x128xf32>
      %c0 = arith.constant 0 : index
      %c0_3 = arith.constant 0 : index
      %12 = vector.load %arg7[%c0, %c0_3] : memref<3x128xf32, #tpu.memory_space<vmem>>, vector<3x128xf32>
      tpu.vector_store %arg7[%c0, %c0_3], %11 {strides = array<i32>} : memref<3x128xf32, #tpu.memory_space<vmem>>, vector<3x128xf32>,
      %cst_4 = arith.constant 0.000000e+00 : f32
      %13 = vector.broadcast %cst_4 : f32 to vector<3x128xf32>
      %c0_5 = arith.constant 0 : index
      %c0_6 = arith.constant 0 : index
      %14 = vector.load %arg8[%c0_5, %c0_6] : memref<3x128xf32, #tpu.memory_space<vmem>>, vector<3x128xf32>
      tpu.vector_store %arg8[%c0_5, %c0_6], %13 {strides = array<i32>} : memref<3x128xf32, #tpu.memory_space<vmem>>, vector<3x128xf32>,
    } else {
    }
    %3 = arith.index_cast %arg0 : i32 to index
    %4 = memref.load %arg3[%3] : memref<1xi32, #tpu.memory_space<smem>>
    %5 = arith.cmpi sle, %arg2, %4 : i32
    %6 = arith.extui %5 : i1 to i32
    %c0_i32_1 = arith.constant 0 : i32
    %7 = arith.cmpi ne, %6, %c0_i32_1 : i32
    scf.if %7 {
      %c0 = arith.constant 0 : index
      %c0_3 = arith.constant 0 : index
      %c0_4 = arith.constant 0 : index
      %11 = vector.load %arg4[%c0, %c0_3, %c0_4] : memref<3x1x1xi32, #tpu.memory_space<vmem>>, vector<3x1x1xi32>
      %c0_5 = arith.constant 0 : index
      %c0_6 = arith.constant 0 : index
      %c0_7 = arith.constant 0 : index
      %12 = vector.load %arg5[%c0_5, %c0_6, %c0_7] : memref<3x128x128xf32, #tpu.memory_space<vmem>>, vector<3x128x128xf32>
      %13 = tpu.iota {dimensions = array<i32: 2>} : vector<3x1x128xi32>
      %c128_i32 = arith.constant 128 : i32
      %14 = arith.muli %arg2, %c128_i32 : i32
      %c0_i32_8 = arith.constant 0 : i32
      %15 = arith.addi %14, %c0_i32_8 : i32
      %16 = vector.broadcast %15 : i32 to vector<3x1x128xi32>
      %17 = arith.addi %13, %16 : vector<3x1x128xi32>
      %18 = vector.broadcast %11 : vector<3x1x1xi32> to vector<3x1x128xi32>
      %19 = arith.cmpi slt, %17, %18 : vector<3x1x128xi32>
      %cst = arith.constant 0.000000e+00 : f32
      %20 = vector.shape_cast %19 : vector<3x1x128xi1> to vector<3x1x128xi1>
      %21 = vector.broadcast %20 : vector<3x1x128xi1> to vector<3x128x128xi1>
      %22 = vector.broadcast %cst : f32 to vector<3x128x128xf32>
      %23 = arith.select %21, %12, %22 : vector<3x128x128xi1>, vector<3x128x128xf32>
      %c0_9 = arith.constant 0 : index
      %c0_10 = arith.constant 0 : index
      %24 = vector.load %arg7[%c0_9, %c0_10] : memref<3x128xf32, #tpu.memory_space<vmem>>, vector<3x128xf32>
      %cst_11 = arith.constant dense<0.000000e+00> : vector<3x128xf32>
      %25 = vector.multi_reduction <add>, %23, %cst_11 [2] : vector<3x128x128xf32> to vector<3x128xf32>
      %26 = arith.addf %24, %25 : vector<3x128xf32>
      %c0_12 = arith.constant 0 : index
      %c0_13 = arith.constant 0 : index
      %27 = vector.load %arg7[%c0_12, %c0_13] : memref<3x128xf32, #tpu.memory_space<vmem>>, vector<3x128xf32>
      tpu.vector_store %arg7[%c0_12, %c0_13], %26 {strides = array<i32>} : memref<3x128xf32, #tpu.memory_space<vmem>>, vector<3x128xf32>,
      %c0_14 = arith.constant 0 : index
      %c0_15 = arith.constant 0 : index
      %28 = vector.load %arg8[%c0_14, %c0_15] : memref<3x128xf32, #tpu.memory_space<vmem>>, vector<3x128xf32>
      %29 = arith.mulf %23, %23 : vector<3x128x128xf32>
      %cst_16 = arith.constant dense<0.000000e+00> : vector<3x128xf32>
      %30 = vector.multi_reduction <add>, %29, %cst_16 [2] : vector<3x128x128xf32> to vector<3x128xf32>
      %31 = arith.addf %28, %30 : vector<3x128xf32>
      %c0_17 = arith.constant 0 : index
      %c0_18 = arith.constant 0 : index
      %32 = vector.load %arg8[%c0_17, %c0_18] : memref<3x128xf32, #tpu.memory_space<vmem>>, vector<3x128xf32>
      tpu.vector_store %arg8[%c0_17, %c0_18], %31 {strides = array<i32>} : memref<3x128xf32, #tpu.memory_space<vmem>>, vector<3x128xf32>,
    } else {
    }
    %c2_i32 = arith.constant 2 : i32
    %8 = arith.cmpi eq, %arg2, %c2_i32 : i32
    %9 = arith.extui %8 : i1 to i32
    %c0_i32_2 = arith.constant 0 : i32
    %10 = arith.cmpi ne, %9, %c0_i32_2 : i32
    scf.if %10 {
      %c0 = arith.constant 0 : index
      %c0_3 = arith.constant 0 : index
      %11 = vector.load %arg7[%c0, %c0_3] : memref<3x128xf32, #tpu.memory_space<vmem>>, vector<3x128xf32>
      %c0_4 = arith.constant 0 : index
      %c0_5 = arith.constant 0 : index
      %c0_6 = arith.constant 0 : index
      %12 = vector.load %arg4[%c0_4, %c0_5, %c0_6] : memref<3x1x1xi32, #tpu.memory_space<vmem>>, vector<3x1x1xi32>
      %13 = vector.shape_cast %12 : vector<3x1x1xi32> to vector<3x1xi32>
      %14 = arith.sitofp %13 : vector<3x1xi32> to vector<3x1xf32>
      %15 = vector.broadcast %14 : vector<3x1xf32> to vector<3x128xf32>
      %16 = arith.divf %11, %15 : vector<3x128xf32>
      %c0_7 = arith.constant 0 : index
      %c0_8 = arith.constant 0 : index
      %17 = vector.load %arg8[%c0_7, %c0_8] : memref<3x128xf32, #tpu.memory_space<vmem>>, vector<3x128xf32>
      %18 = arith.mulf %11, %16 : vector<3x128xf32>
      %19 = arith.subf %17, %18 : vector<3x128xf32>
      %cst = arith.constant 1.000000e+00 : f32
      %20 = vector.broadcast %cst : f32 to vector<3x1xf32>
      %21 = arith.subf %14, %20 : vector<3x1xf32>
      %22 = vector.broadcast %21 : vector<3x1xf32> to vector<3x128xf32>
      %23 = arith.divf %19, %22 : vector<3x128xf32>
      %cst_9 = arith.constant 1.000000e-10 : f32
      %24 = vector.broadcast %cst_9 : f32 to vector<3x128xf32>
      %25 = arith.maximumf %23, %24 : vector<3x128xf32>
      %26 = math.sqrt %25 : vector<3x128xf32>
      %27 = vector.shape_cast %16 : vector<3x128xf32> to vector<3x1x128xf32>
      %28 = vector.shape_cast %26 : vector<3x128xf32> to vector<3x1x128xf32>
      %29 = tpu.concatenate %27, %28 in 1 : vector<3x1x128xf32>, vector<3x1x128xf32> -> vector<3x2x128xf32>
      %c0_10 = arith.constant 0 : index
      %c0_11 = arith.constant 0 : index
      %c0_12 = arith.constant 0 : index
      %30 = vector.load %arg6[%c0_10, %c0_11, %c0_12] : memref<3x2x128xf32, #tpu.memory_space<vmem>>, vector<3x2x128xf32>
      tpu.vector_store %arg6[%c0_10, %c0_11, %c0_12], %29 {strides = array<i32>} : memref<3x2x128xf32, #tpu.memory_space<vmem>>, vector<3x2x128xf32>,
    } else {
    }
    return
  }
  func.func @transform_0(%arg0: i32, %arg1: i32, %arg2: i32, %arg3: memref<1xi32, #tpu.memory_space<smem>>) -> (i32, i32, i32) {
    %c0_i32 = arith.constant 0 : i32
    %c0_i32_0 = arith.constant 0 : i32
    %c0_i32_1 = arith.constant 0 : i32
    return %arg0, %c0_i32, %c0_i32_0 : i32, i32, i32
  }
  func.func @transform_1(%arg0: i32, %arg1: i32, %arg2: i32, %arg3: memref<1xi32, #tpu.memory_space<smem>>) -> (i32, i32, i32) {
    %0 = arith.index_cast %arg0 : i32 to index
    %1 = memref.load %arg3[%0] : memref<1xi32, #tpu.memory_space<smem>>
    %2 = arith.minsi %arg2, %1 : i32
    %c0_i32 = arith.constant 0 : i32
    return %arg0, %arg1, %2 : i32, i32, i32
  }
  func.func @transform_2(%arg0: i32, %arg1: i32, %arg2: i32, %arg3: memref<1xi32, #tpu.memory_space<smem>>) -> (i32, i32, i32) {
    %c0_i32 = arith.constant 0 : i32
    %c0_i32_0 = arith.constant 0 : i32
    return %arg0, %c0_i32, %arg1 : i32, i32, i32
  }
}

</mosaic_0001>

<bundles_post_ra>
// kernel: tpu_custom_call.1
= control target key start
LH: loop header
LB: loop body
LE: loop exit
PB: predicated region body
PF: predicated region fallthrough
CT: control target
= control target key end

     0   :  { %s2674_s0 = inlined_call_operand.<no memory space> [shape: s32[1], index: 0, kind: input, shape index: {}]   ;;  %s2675_s1 = inlined_call_operand.vmem [shape: s32[3,1,1], index: 1, kind: input, shape index: {}]   ;;  %s2676_s2 = inlined_call_operand.vmem [shape: f32[3,256,320], index: 2, kind: input, shape index: {}]   ;;  %s2677_s3 = inlined_call_operand.hbm [shape: f32[3,2,256], index: 3, kind: output, shape index: {}]  }
   0x1   :  { %8 = sst [smem:[#allocation5]] %s2674_s0 }
   0x2   :  { %9 = vsyncpa [#allocation8], 0 }
   0x3   :  { %11 = vsyncpa [#allocation8 + $0x1], 0  ;;  %s1657_s14 = smov 0   ;;  %s1659_s15 = smov 0  }
   0x4   :  { %s1661_s16 = smov 0   ;;  %s1663_s17 = smov 0  }
   0x5   :  { %s1665_s18 = smov 0   ;;  %s1667_s19 = smov 0  }
   0x6   :  { %s1669_s20 = smov 0   ;;  %s1671_s21 = smov 0  }
   0x7   :  { %s1673_s22 = smov 0   ;;  %s1675_s0 = smov 0  }
   0x8 LB: > { %s1389_s23 = sadd.s32 4294967295, %s1626_s0   ;;  %s1390_s24 = sadd.s32 4294967294, %s1626_s0   ;;  %s1626_s0 = sphi %s1675_s0, %s17_s0   ;;  %s1622_s22 = sphi %s1673_s22, %s2700_s22   ;;  %s1618_s21 = sphi %s1671_s21, %s2699_s21   ;;  %s1614_s20 = sphi %s1669_s20, %s2698_s20   ;;  %s1610_s19 = sphi %s1667_s19, %s2697_s19   ;;  %s1606_s18 = sphi %s1665_s18, %s2696_s18   ;;  %s1602_s17 = sphi %s1663_s17, %s2695_s17   ;;  %s1598_s16 = sphi %s1661_s16, %s2694_s16   ;;  %s1594_s15 = sphi %s1659_s15, %s2693_s15   ;;  %s1590_s14 = sphi %s1657_s14, %s2692_s14  }
   0x9   : > { %s29_s25 = sadd.s32 1, %s1618_s21  ;;  %s32_s26 = sadd.s32 1, %s1622_s22 }
   0xa   : > { %p30_p0 = scmp.ge.s32.totalorder %s29_s25, 3  ;;  %s66_s27 = sld [smem:[#allocation5]] }
   0xb   : > { %s79_s28 = sadd.s32 1, %s1606_s18  ;;  %p86_p1 = scmp.ne.s32.totalorder %s1606_s18, %s1602_s17 }
   0xc   : > { %s2702_s25 = smov (%p30_p0, %s29_s25), 0  ;;  %s2704_s26 = smov (!%p30_p0, %s32_s26), %s1622_s22 }
   0xd   : > { %p87_p2 = scmp.eq.s32.totalorder %s1626_s0, 0  ;;  %s107_s29 = sadd.s32 1, %s1598_s16 }
   0xe   : > { %p34_p3 = scmp.ge.s32.totalorder %s2704_s26, 2  ;;  %p117_p4 = scmp.ne.s32.totalorder %s1598_s16, %s1594_s15 }
   0xf   : > { %p1732_p7 = por %p87_p2, %p86_p1  ;;  %p118_p9 = scmp.eq.s32.totalorder %s1389_s23, 5 }
  0x10   : > { %p67_p5 = scmp.lt.s32.totalorder %s1618_s21, %s66_s27  ;;  %p70_p6 = scmp.lt.s32.totalorder %s2702_s25, %s66_s27 }
  0x11   : > { %s2706_s26 = smov (%p34_p3, %s2704_s26), 0  ;;  %p123_p11 = scmp.ne.s32.totalorder %s1594_s15, %s1590_s14 }
  0x12   : > { %s68_s30 = scalar_select %p67_p5, %s1618_s21, %s66_s27 }
  0x13   : > { %s71_s4 = scalar_select %p70_p6, %s2702_s25, %s66_s27 }
  0x14   : > { %s73_s5 = ssub.s32 %s1622_s22, %s2706_s26  ;;  %p1747_p12 = por %p118_p9, %p117_p4 }
  0x15   : > { %s75_s7 = ssub.s32 %s68_s30, %s71_s4  ;;  %p105_p8 = scmp.eq.s32.totalorder %s73_s5, 0 }
  0x16   : > { %s76_s8 = sor.u32 %s75_s7, %s73_s5  ;;  %p124_p13 = scmp.eq.s32.totalorder %s1390_s24, 5 }
  0x17   : > { %p77_p10 = scmp.eq.s32.totalorder %s76_s8, 0  ;;  %p1393_p1 = scmp.ge.s32.totalorder %s1626_s0, 6 }
  0x18   : > { %s1739_s9 = scalar_select %p105_p8, %s1598_s16, %s107_s29  }
  0x19   : > { %s1742_s10 = scalar_select %p77_p10, %s1606_s18, %s79_s28  }
  0x1a   : > { %p1751_p0 = por %p124_p13, %p123_p11  ;;  %148 = sbr.rel (%p1393_p1) target bundleno = 93 (0x5d), region = 20 }
  0x1f   : > { %151 = sbr.rel (!%p1732_p7) target bundleno = 93 (0x5d), region = 24  ;;  %s156_s13 = sld [smem:[#allocation5]] (%p1732_p7) }
  0x20   : > { %s153_s23 = sand.u32 (%p1732_p7), 1, %s1606_s18   ;;  %s1409_s27 = smul.u32 (%p1732_p7), 48, %s1622_s22 }
  0x21   : > { %s1408_s28 = smul.u32 (%p1732_p7), 384, %s153_s23 }
  0x23   : > { %s1770_s6 = scalar_lea.vmem (%p1732_p7), [#allocation6], %s1408_s28 }
  0x25   : > { %p157_p2 = scmp.lt.s32.totalorder %s1618_s21, %s156_s13 }
  0x27   : > { %s158_s24 = scalar_select %p157_p2, %s1618_s21, %s156_s13 }
  0x29   : > { %s162_s29 = sadd.s32 %s1409_s27, %s158_s24 }
  0x2a   : > { %s1396_s30 = sshll.u32 %s162_s29, 3 }
  0x2b   : > { %s1765_s7 = scalar_lea.vmem %s2676_s2, %s1396_s30 }
  0x2c   : > { %v289_v0 = vld [vmem:[%s1765_s7] sm:$0xff]  ;;  %v291_v1 = vld [vmem:[%s1765_s7 + $0x18] sm:$0xff]  ;;  %v293_v2 = vld [vmem:[%s1765_s7 + $0x30] sm:$0xff] }
  0x2d   : > { %290 = vst [vmem:[%s1770_s6] sm:$0xff] %v289_v0  ;;  %v295_v3 = vld [vmem:[%s1765_s7 + $0x48] sm:$0xff]  ;;  %v297_v4 = vld [vmem:[%s1765_s7 + $0x60] sm:$0xff]  ;;  %v299_v5 = vld [vmem:[%s1765_s7 + $0x78] sm:$0xff] }
  0x2e   : > { %292 = vst [vmem:[%s1770_s6 + $0x8] sm:$0xff] %v291_v1  ;;  %v301_v6 = vld [vmem:[%s1765_s7 + $0x90] sm:$0xff]  ;;  %v303_v7 = vld [vmem:[%s1765_s7 + $0xa8] sm:$0xff]  ;;  %v305_v8 = vld [vmem:[%s1765_s7 + $0xc0] sm:$0xff] }
  0x2f   : > { %294 = vst [vmem:[%s1770_s6 + $0x10] sm:$0xff] %v293_v2  ;;  %v307_v9 = vld [vmem:[%s1765_s7 + $0xd8] sm:$0xff]  ;;  %v309_v10 = vld [vmem:[%s1765_s7 + $0xf0] sm:$0xff]  ;;  %v311_v11 = vld [vmem:[%s1765_s7 + $0x108] sm:$0xff] }
  0x30   : > { %296 = vst [vmem:[%s1770_s6 + $0x18] sm:$0xff] %v295_v3  ;;  %v313_v12 = vld [vmem:[%s1765_s7 + $0x120] sm:$0xff]  ;;  %v315_v13 = vld [vmem:[%s1765_s7 + $0x138] sm:$0xff]  ;;  %v317_v14 = vld [vmem:[%s1765_s7 + $0x150] sm:$0xff] }
  0x31   : > { %298 = vst [vmem:[%s1770_s6 + $0x20] sm:$0xff] %v297_v4  ;;  %v319_v15 = vld [vmem:[%s1765_s7 + $0x168] sm:$0xff]  ;;  %v321_v16 = vld [vmem:[%s1765_s7 + $0x300] sm:$0xff]  ;;  %v323_v17 = vld [vmem:[%s1765_s7 + $0x318] sm:$0xff] }
  0x32   : > { %300 = vst [vmem:[%s1770_s6 + $0x28] sm:$0xff] %v299_v5  ;;  %v325_v18 = vld [vmem:[%s1765_s7 + $0x330] sm:$0xff]  ;;  %v327_v19 = vld [vmem:[%s1765_s7 + $0x348] sm:$0xff]  ;;  %v329_v20 = vld [vmem:[%s1765_s7 + $0x360] sm:$0xff] }
  0x33   : > { %302 = vst [vmem:[%s1770_s6 + $0x30] sm:$0xff] %v301_v6  ;;  %v331_v21 = vld [vmem:[%s1765_s7 + $0x378] sm:$0xff]  ;;  %v333_v22 = vld [vmem:[%s1765_s7 + $0x390] sm:$0xff]  ;;  %v335_v23 = vld [vmem:[%s1765_s7 + $0x3a8] sm:$0xff] }
  0x34   : > { %304 = vst [vmem:[%s1770_s6 + $0x38] sm:$0xff] %v303_v7  ;;  %v337_v24 = vld [vmem:[%s1765_s7 + $0x3c0] sm:$0xff]  ;;  %v339_v25 = vld [vmem:[%s1765_s7 + $0x3d8] sm:$0xff]  ;;  %v341_v26 = vld [vmem:[%s1765_s7 + $0x3f0] sm:$0xff] }
  0x35   : > { %306 = vst [vmem:[%s1770_s6 + $0x40] sm:$0xff] %v305_v8  ;;  %v343_v27 = vld [vmem:[%s1765_s7 + $0x408] sm:$0xff]  ;;  %v345_v28 = vld [vmem:[%s1765_s7 + $0x420] sm:$0xff]  ;;  %v347_v29 = vld [vmem:[%s1765_s7 + $0x438] sm:$0xff] }
  0x36   : > { %308 = vst [vmem:[%s1770_s6 + $0x48] sm:$0xff] %v307_v9  ;;  %v349_v30 = vld [vmem:[%s1765_s7 + $0x450] sm:$0xff]  ;;  %v351_v31 = vld [vmem:[%s1765_s7 + $0x468] sm:$0xff]  ;;  %v353_v32 = vld [vmem:[%s1765_s7 + $0x600] sm:$0xff] }
  0x37   : > { %310 = vst [vmem:[%s1770_s6 + $0x50] sm:$0xff] %v309_v10  ;;  %v355_v33 = vld [vmem:[%s1765_s7 + $0x618] sm:$0xff]  ;;  %v357_v34 = vld [vmem:[%s1765_s7 + $0x630] sm:$0xff]  ;;  %v359_v35 = vld [vmem:[%s1765_s7 + $0x648] sm:$0xff] }
  0x38   : > { %312 = vst [vmem:[%s1770_s6 + $0x58] sm:$0xff] %v311_v11  ;;  %v361_v36 = vld [vmem:[%s1765_s7 + $0x660] sm:$0xff]  ;;  %v363_v37 = vld [vmem:[%s1765_s7 + $0x678] sm:$0xff]  ;;  %v365_v38 = vld [vmem:[%s1765_s7 + $0x690] sm:$0xff] }
  0x39   : > { %314 = vst [vmem:[%s1770_s6 + $0x60] sm:$0xff] %v313_v12  ;;  %v367_v39 = vld [vmem:[%s1765_s7 + $0x6a8] sm:$0xff]  ;;  %v369_v40 = vld [vmem:[%s1765_s7 + $0x6c0] sm:$0xff]  ;;  %v371_v41 = vld [vmem:[%s1765_s7 + $0x6d8] sm:$0xff] }
  0x3a   : > { %316 = vst [vmem:[%s1770_s6 + $0x68] sm:$0xff] %v315_v13  ;;  %v373_v42 = vld [vmem:[%s1765_s7 + $0x6f0] sm:$0xff]  ;;  %v375_v43 = vld [vmem:[%s1765_s7 + $0x708] sm:$0xff]  ;;  %v377_v44 = vld [vmem:[%s1765_s7 + $0x720] sm:$0xff] }
  0x3b   : > { %318 = vst [vmem:[%s1770_s6 + $0x70] sm:$0xff] %v317_v14  ;;  %v379_v45 = vld [vmem:[%s1765_s7 + $0x738] sm:$0xff]  ;;  %v381_v46 = vld [vmem:[%s1765_s7 + $0x750] sm:$0xff]  ;;  %v383_v47 = vld [vmem:[%s1765_s7 + $0x768] sm:$0xff] }
  0x3c   : > { %320 = vst [vmem:[%s1770_s6 + $0x78] sm:$0xff] %v319_v15 }
  0x3d   : > { %322 = vst [vmem:[%s1770_s6 + $0x80] sm:$0xff] %v321_v16 }
  0x3e   : > { %324 = vst [vmem:[%s1770_s6 + $0x88] sm:$0xff] %v323_v17 }
  0x3f   : > { %326 = vst [vmem:[%s1770_s6 + $0x90] sm:$0xff] %v325_v18 }
  0x40   : > { %328 = vst [vmem:[%s1770_s6 + $0x98] sm:$0xff] %v327_v19 }
  0x41   : > { %330 = vst [vmem:[%s1770_s6 + $0xa0] sm:$0xff] %v329_v20 }
  0x42   : > { %332 = vst [vmem:[%s1770_s6 + $0xa8] sm:$0xff] %v331_v21 }
  0x43   : > { %334 = vst [vmem:[%s1770_s6 + $0xb0] sm:$0xff] %v333_v22 }
  0x44   : > { %336 = vst [vmem:[%s1770_s6 + $0xb8] sm:$0xff] %v335_v23 }
  0x45   : > { %338 = vst [vmem:[%s1770_s6 + $0xc0] sm:$0xff] %v337_v24 }
  0x46   : > { %340 = vst [vmem:[%s1770_s6 + $0xc8] sm:$0xff] %v339_v25 }
  0x47   : > { %342 = vst [vmem:[%s1770_s6 + $0xd0] sm:$0xff] %v341_v26 }
  0x48   : > { %344 = vst [vmem:[%s1770_s6 + $0xd8] sm:$0xff] %v343_v27 }
  0x49   : > { %346 = vst [vmem:[%s1770_s6 + $0xe0] sm:$0xff] %v345_v28 }
  0x4a   : > { %348 = vst [vmem:[%s1770_s6 + $0xe8] sm:$0xff] %v347_v29 }
  0x4b   : > { %350 = vst [vmem:[%s1770_s6 + $0xf0] sm:$0xff] %v349_v30 }
  0x4c   : > { %352 = vst [vmem:[%s1770_s6 + $0xf8] sm:$0xff] %v351_v31 }
  0x4d   : > { %354 = vst [vmem:[%s1770_s6 + $0x100] sm:$0xff] %v353_v32 }
  0x4e   : > { %356 = vst [vmem:[%s1770_s6 + $0x108] sm:$0xff] %v355_v33 }
  0x4f   : > { %358 = vst [vmem:[%s1770_s6 + $0x110] sm:$0xff] %v357_v34 }
  0x50   : > { %360 = vst [vmem:[%s1770_s6 + $0x118] sm:$0xff] %v359_v35 }
  0x51   : > { %362 = vst [vmem:[%s1770_s6 + $0x120] sm:$0xff] %v361_v36 }
  0x52   : > { %364 = vst [vmem:[%s1770_s6 + $0x128] sm:$0xff] %v363_v37 }
  0x53   : > { %366 = vst [vmem:[%s1770_s6 + $0x130] sm:$0xff] %v365_v38 }
  0x54   : > { %368 = vst [vmem:[%s1770_s6 + $0x138] sm:$0xff] %v367_v39 }
  0x55   : > { %370 = vst [vmem:[%s1770_s6 + $0x140] sm:$0xff] %v369_v40 }
  0x56   : > { %372 = vst [vmem:[%s1770_s6 + $0x148] sm:$0xff] %v371_v41 }
  0x57   : > { %374 = vst [vmem:[%s1770_s6 + $0x150] sm:$0xff] %v373_v42 }
  0x58   : > { %376 = vst [vmem:[%s1770_s6 + $0x158] sm:$0xff] %v375_v43 }
  0x59   : > { %378 = vst [vmem:[%s1770_s6 + $0x160] sm:$0xff] %v377_v44 }
  0x5a   : > { %380 = vst [vmem:[%s1770_s6 + $0x168] sm:$0xff] %v379_v45 }
  0x5b   : > { %382 = vst [vmem:[%s1770_s6 + $0x170] sm:$0xff] %v381_v46 }
  0x5c   : > { %384 = vst [vmem:[%s1770_s6 + $0x178] sm:$0xff] %v383_v47 }
  0x5d PF: > { %p1397_p3 = scmp.ge.s32.totalorder %s1626_s0, 1  ;;  %p389_p4 = scmp.lt.s32.totalorder %s1626_s0, 7 }
  0x5f   : > { %p390_p5 = pnand %p1397_p3, %p389_p4 }
  0x60   : > { %s396_s8 = sand.u32 (!%p390_p5), 1, %s1602_s17   ;;  %s418_s13 = sand.u32 (!%p390_p5), 1, %s1594_s15  }
  0x61   : > { %393 = sbr.rel (%p390_p5) target bundleno = 867 (0x363), region = 62  ;;  %p1398_p6 = scmp.ne.s32.totalorder (!%p390_p5), %s1610_s19, 0 }
  0x62   : > { %s1410_s23 = smul.u32 (!%p390_p5), 384, %s396_s8 }
  0x63   : > { %s1411_s27 = smul.u32 (!%p390_p5), 6, %s418_s13 }
  0x64   : > { %s1871_s28 = scalar_lea.vmem (!%p390_p5), [#allocation6], %s1410_s23 }
  0x65   : > { %s1873_s24 = scalar_lea.vmem (!%p390_p5), [#allocation7], %s1411_s27 }
  0x66   : > { %435 = sbr.rel (%p1398_p6) target bundleno = 110 (0x6e), region = 70 }
  0x6b   : > { %v1628_v48 = vmov 0.0  }
  0x6c   : > { %436 = vst [vmem:[#allocation2] sm:$0x7] %v1628_v48 }
  0x6d   : > { %437 = vst [vmem:[#allocation3] sm:$0x7] %v1628_v48 }
  0x6e PF: > { %s438_s29 = sld [smem:[#allocation5]] }
  0x74   : > { %p1399_p7 = scmp.gt.s32.totalorder %s1610_s19, %s438_s29 }
  0x76   : > { %442 = sbr.rel (%p1399_p7) target bundleno = 648 (0x288), region = 74 }
  0x7b   : > { %v443_v49 = vld [vmem:[%s2675_s1] sm:$0x1]  ;;  %v1629_v50 = vmov 0   ;;  %v445_v51 = vld [vmem:[%s2675_s1 + $0x2] sm:$0x1]  ;;  %v494_v53 = vlaneseq  ;;  %s1400_s8 = sshll.u32 %s1610_s19, 7 }
  0x7c   : > { %1505 = vset.pattern.permute.xlu0 %v1629_v50  ;;  %1506 = vset.pattern.permute.xlu1 %v1629_v50  ;;  %v444_v52 = vld [vmem:[%s2675_s1 + $0x1] sm:$0x1]  ;;  %v497_v55 = vstv %s1400_s8  ;;  %v449_v59 = vld [vmem:[%s1871_s28 + $0x18] sm:$0xff]  ;;  %v447_v60 = vld [vmem:[%s1871_s28 + $0x8] sm:$0xff]  ;;  %vm716_vm3 = vcmask 130112   ;;  %vm720_vm4 = vcmask 195712  }
  0x7d   : > { %500 = vperm.xlu0 %1505, %v443_v49   ;;  %508 = vperm.xlu1 %1506, %v445_v51   ;;  %v1887_v54 = vand.u32 127, %v494_v53  ;;  %v446_v61 = vld [vmem:[%s1871_s28] sm:$0xff]  ;;  %v457_v2 = vld [vmem:[%s1871_s28 + $0x58] sm:$0xff]  ;;  %v448_v3 = vld [vmem:[%s1871_s28 + $0x10] sm:$0xff]  ;;  %vm724_vm5 = vcmask 261312   ;;  %vm728_vm6 = vcmask 326912  }
  0x7e   : > { %v455_v4 = vld [vmem:[%s1871_s28 + $0x48] sm:$0xff]  ;;  %v460_v8 = vld [vmem:[%s1871_s28 + $0x70] sm:$0xff]  ;;  %v450_v9 = vld [vmem:[%s1871_s28 + $0x20] sm:$0xff]  ;;  %vm732_vm7 = vcmask 392512   ;;  %vm736_vm8 = vcmask 458112   ;;  %vm740_vm9 = vcmask 523712  }
  0x7f   : > { %v1890_v56 = vadd.s32 %v497_v55, %v1887_v54  ;;  %v458_v11 = vld [vmem:[%s1871_s28 + $0x60] sm:$0xff]  ;;  %v451_v17 = vld [vmem:[%s1871_s28 + $0x28] sm:$0xff]  ;;  %v461_v19 = vld [vmem:[%s1871_s28 + $0x78] sm:$0xff]  ;;  %vm744_vm10 = vcmask 589312   ;;  %vm748_vm11 = vcmask 654912   ;;  %vm752_vm12 = vcmask 720512  }
  0x80   : > { %v463_v18 = vld [vmem:[%s1871_s28 + $0x88] sm:$0xff]  ;;  %v452_v23 = vld [vmem:[%s1871_s28 + $0x30] sm:$0xff]  ;;  %v466_v24 = vld [vmem:[%s1871_s28 + $0xa0] sm:$0xff]  ;;  %vm756_vm13 = vcmask 786112   ;;  %vm760_vm14 = vcmask 851712   ;;  %vm764_vm15 = vcmask 917312  }
  0x81   : > { %v464_v25 = vld [vmem:[%s1871_s28 + $0x90] sm:$0xff]  ;;  %v453_v29 = vld [vmem:[%s1871_s28 + $0x38] sm:$0xff]  ;;  %v467_v31 = vld [vmem:[%s1871_s28 + $0xa8] sm:$0xff] }
  0x82   : > { %v469_v30 = vld [vmem:[%s1871_s28 + $0xb8] sm:$0xff]  ;;  %v454_v35 = vld [vmem:[%s1871_s28 + $0x40] sm:$0xff]  ;;  %v472_v36 = vld [vmem:[%s1871_s28 + $0xd0] sm:$0xff] }
  0x83   : > { %v470_v37 = vld [vmem:[%s1871_s28 + $0xc0] sm:$0xff]  ;;  %v456_v42 = vld [vmem:[%s1871_s28 + $0x50] sm:$0xff]  ;;  %v475_v43 = vld [vmem:[%s1871_s28 + $0xe8] sm:$0xff] }
  0x84   : > { %v473_v44 = vld [vmem:[%s1871_s28 + $0xd8] sm:$0xff]  ;;  %v478_v50 = vld [vmem:[%s1871_s28 + $0x100] sm:$0xff]  ;;  %v459_v51 = vld [vmem:[%s1871_s28 + $0x68] sm:$0xff] }
  0x85   : > { %504 = vperm.xlu0 %1505, %v444_v52   ;;  %v476_v52 = vld [vmem:[%s1871_s28 + $0xf0] sm:$0xff] }
  0xef   : > { %v501_v57 = vpop.permute.xlu0 %500  ;;  %v509_v41 = vpop.permute.xlu1 %508 }
  0xf0   : > { %v502_v58 = vperm.slane %v501_v57, 0  ;;  %v510_v45 = vperm.slane %v509_v41, 0  ;;  %v481_v57 = vld [vmem:[%s1871_s28 + $0x118] sm:$0xff]  ;;  %v474_v41 = vld [vmem:[%s1871_s28 + $0xe0] sm:$0xff] }
  0xf2   : > { %vm1896_vm0 = vcmp.lt.s32.totalorder %v1890_v56, %v502_v58  ;;  %vm2047_vm2 = vcmp.lt.s32.totalorder %v1890_v56, %v510_v45  ;;  %v479_v58 = vld [vmem:[%s1871_s28 + $0x108] sm:$0xff]  ;;  %v477_v45 = vld [vmem:[%s1871_s28 + $0xf8] sm:$0xff] }
  0xf3   : > { %v1902_v63 = vsel %vm1896_vm0, %v449_v59, 0.0  ;;  %v1906_v0 = vsel %vm1896_vm0, %v447_v60, 0.0  ;;  %v1910_v1 = vsel %vm1896_vm0, %v446_v61, 0.0  ;;  %v1920_v5 = vsel %vm1896_vm0, %v457_v2, 0.0  ;;  %v462_v59 = vld [vmem:[%s1871_s28 + $0x80] sm:$0xff]  ;;  %v484_v2 = vld [vmem:[%s1871_s28 + $0x130] sm:$0xff] }
  0xf4   : > { %575 = vadd.xlane.f32.xlu0 %v1902_v63  ;;  %571 = vadd.xlane.f32.xlu2 %v1906_v0  ;;  %v1924_v6 = vsel %vm1896_vm0, %v448_v3, 0.0  ;;  %v1930_v7 = vsel %vm1896_vm0, %v455_v4, 0.0  ;;  %v1938_v12 = vsel %vm1896_vm0, %v460_v8, 0.0  ;;  %v1942_v13 = vsel %vm1896_vm0, %v450_v9, 0.0  ;;  %v482_v3 = vld [vmem:[%s1871_s28 + $0x120] sm:$0xff]  ;;  %v465_v4 = vld [vmem:[%s1871_s28 + $0x98] sm:$0xff] }
  0xf5   : > { %569 = vadd.xlane.f32.xlu1 %v1910_v1  ;;  %v1948_v15 = vsel %vm1896_vm0, %v458_v11, 0.0  ;;  %v1961_v20 = vsel %vm1896_vm0, %v451_v17, 0.0  ;;  %v1970_v22 = vsel %vm1896_vm0, %v461_v19, 0.0  ;;  %v1979_v26 = vsel %vm1896_vm0, %v452_v23, 0.0  ;;  %v487_v11 = vld [vmem:[%s1871_s28 + $0x148] sm:$0xff]  ;;  %v468_v17 = vld [vmem:[%s1871_s28 + $0xb0] sm:$0xff] }
  0xf6   : > { %v1997_v32 = vsel %vm1896_vm0, %v453_v29, 0.0  ;;  %v2015_v38 = vsel %vm1896_vm0, %v454_v35, 0.0  ;;  %v2033_v46 = vsel %vm1896_vm0, %v456_v42, 0.0  ;;  %v2056_v53 = vsel %vm2047_vm2, %v478_v50, 0.0  ;;  %v471_v29 = vld [vmem:[%s1871_s28 + $0xc8] sm:$0xff] }
  0xf7   : > { %v505_v10 = vpop.permute.xlu0 %504  ;;  %v2060_v55 = vsel %vm1896_vm0, %v459_v51, 0.0  ;;  %v2074_v60 = vsel %vm2047_vm2, %v481_v57, 0.0  ;;  %v2078_v61 = vsel %vm2047_vm2, %v479_v58, 0.0  ;;  %v2092_v8 = vsel %vm2047_vm2, %v484_v2, 0.0 }
  0xf8   : > { %v506_v14 = vperm.slane %v505_v10, 0  ;;  %v2096_v9 = vsel %vm2047_vm2, %v482_v3, 0.0  ;;  %v846_v50 = vmul.f32 %v1924_v6, %v1924_v6  ;;  %v844_v51 = vmul.f32 %v1910_v1, %v1910_v1  ;;  %v480_v3 = vld [vmem:[%s1871_s28 + $0x110] sm:$0xff] }
  0xf9   : > { %v2170_v57 = vadd.s32 4294967288, %v1887_v54  ;;  %v849_v16 = vmul.f32 %v1961_v20, %v1961_v20  ;;  %vm768_vm0 = vcmask 982912  }
  0xfa   : > { %vm1952_vm1 = vcmp.lt.s32.totalorder %v1890_v56, %v506_v14  ;;  %v485_v14 = vld [vmem:[%s1871_s28 + $0x138] sm:$0xff] }
  0xfb   : > { %v1965_v21 = vsel %vm1952_vm1, %v463_v18, 0.0  ;;  %v1983_v27 = vsel %vm1952_vm1, %v466_v24, 0.0  ;;  %v1988_v28 = vsel %vm1952_vm1, %v464_v25, 0.0  ;;  %v2001_v33 = vsel %vm1952_vm1, %v469_v30, 0.0  ;;  %v490_v24 = vld [vmem:[%s1871_s28 + $0x160] sm:$0xff]  ;;  %v488_v25 = vld [vmem:[%s1871_s28 + $0x150] sm:$0xff] }
  0xfc   : > { %591 = vadd.xlane.f32.xlu0 %v1920_v5  ;;  %573 = vadd.xlane.f32.xlu2 %v1924_v6  ;;  %v2006_v34 = vsel %vm1952_vm1, %v467_v31, 0.0  ;;  %v2019_v39 = vsel %vm1952_vm1, %v472_v36, 0.0  ;;  %v2024_v40 = vsel %vm1952_vm1, %v470_v37, 0.0  ;;  %v2037_v47 = vsel %vm1952_vm1, %v475_v43, 0.0  ;;  %v493_v36 = vld [vmem:[%s1871_s28 + $0x178] sm:$0xff]  ;;  %v491_v37 = vld [vmem:[%s1871_s28 + $0x168] sm:$0xff] }
  0xfd   : > { %587 = vadd.xlane.f32.xlu1 %v1930_v7  ;;  %v2042_v48 = vsel %vm1952_vm1, %v473_v44, 0.0  ;;  %v2065_v56 = vsel %vm1952_vm1, %v476_v52, 0.0  ;;  %v2082_v62 = vsel %vm1952_vm1, %v462_v59, 0.0  ;;  %v2100_v10 = vsel %vm1952_vm1, %v465_v4, 0.0 }
  0xfe   : > { %v2110_v18 = vsel %vm2047_vm2, %v487_v11, 0.0  ;;  %v2114_v19 = vsel %vm2047_vm2, %v485_v14, 0.0  ;;  %v2118_v23 = vsel %vm1952_vm1, %v468_v17, 0.0  ;;  %v2128_v30 = vsel %vm2047_vm2, %v490_v24, 0.0 }
  0xff   : > { %v2132_v31 = vsel %vm2047_vm2, %v488_v25, 0.0  ;;  %v2136_v35 = vsel %vm1952_vm1, %v471_v29, 0.0  ;;  %v2146_v42 = vsel %vm2047_vm2, %v493_v36, 0.0  ;;  %v2150_v43 = vsel %vm2047_vm2, %v491_v37, 0.0  ;;  %v483_v36 = vld [vmem:[%s1871_s28 + $0x128] sm:$0xff] }
 0x100   : > { %v2154_v44 = vsel %vm1952_vm1, %v474_v41, 0.0  ;;  %v2166_v52 = vsel %vm1952_vm1, %v477_v45, 0.0  ;;  %v847_v11 = vmul.f32 %v1902_v63, %v1902_v63  ;;  %v2182_v14 = vsel %vm2047_vm2, %v480_v3, 0.0  ;;  %v486_v3 = vld [vmem:[%s1871_s28 + $0x140] sm:$0xff] }
 0x101   : > { %v2186_v17 = vadd.s32 4294967280, %v1887_v54  ;;  %v2189_v24 = vadd.s32 4294967272, %v1887_v54  ;;  %v852_v45 = vmul.f32 %v2015_v38, %v2015_v38  ;;  %v864_v49 = vmul.f32 %v1983_v27, %v1983_v27 }
 0x102   : > { %vm772_vm1 = vcmask 1048512  }
 0x104   : > { %597 = vadd.xlane.f32.xlu0 %v1938_v12  ;;  %577 = vadd.xlane.f32.xlu2 %v1942_v13 }
 0x105   : > { %593 = vadd.xlane.f32.xlu1 %v1948_v15 }
 0x10c   : > { %579 = vadd.xlane.f32.xlu2 %v1961_v20  ;;  %603 = vadd.xlane.f32.xlu0 %v1965_v21 }
 0x10d   : > { %599 = vadd.xlane.f32.xlu1 %v1970_v22 }
 0x114   : > { %581 = vadd.xlane.f32.xlu2 %v1979_v26  ;;  %609 = vadd.xlane.f32.xlu0 %v1983_v27 }
 0x115   : > { %605 = vadd.xlane.f32.xlu1 %v1988_v28 }
 0x11c   : > { %583 = vadd.xlane.f32.xlu2 %v1997_v32  ;;  %615 = vadd.xlane.f32.xlu0 %v2001_v33 }
 0x11d   : > { %611 = vadd.xlane.f32.xlu1 %v2006_v34 }
 0x124   : > { %585 = vadd.xlane.f32.xlu2 %v2015_v38  ;;  %621 = vadd.xlane.f32.xlu0 %v2019_v39 }
 0x125   : > { %617 = vadd.xlane.f32.xlu1 %v2024_v40 }
 0x12c   : > { %589 = vadd.xlane.f32.xlu2 %v2033_v46  ;;  %627 = vadd.xlane.f32.xlu0 %v2037_v47 }
 0x12d   : > { %623 = vadd.xlane.f32.xlu1 %v2042_v48 }
 0x134   : > { %595 = vadd.xlane.f32.xlu2 %v2060_v55  ;;  %633 = vadd.xlane.f32.xlu0 %v2056_v53 }
 0x135   : > { %629 = vadd.xlane.f32.xlu1 %v2065_v56 }
 0x13c   : > { %639 = vadd.xlane.f32.xlu0 %v2074_v60  ;;  %601 = vadd.xlane.f32.xlu2 %v2082_v62 }
 0x13d   : > { %635 = vadd.xlane.f32.xlu1 %v2078_v61 }
 0x144   : > { %645 = vadd.xlane.f32.xlu0 %v2092_v8  ;;  %607 = vadd.xlane.f32.xlu2 %v2100_v10 }
 0x145   : > { %641 = vadd.xlane.f32.xlu1 %v2096_v9 }
 0x14c   : > { %651 = vadd.xlane.f32.xlu0 %v2110_v18  ;;  %613 = vadd.xlane.f32.xlu2 %v2118_v23 }
 0x14d   : > { %647 = vadd.xlane.f32.xlu1 %v2114_v19 }
 0x154   : > { %657 = vadd.xlane.f32.xlu0 %v2128_v30  ;;  %619 = vadd.xlane.f32.xlu2 %v2136_v35 }
 0x155   : > { %653 = vadd.xlane.f32.xlu1 %v2132_v31 }
 0x15c   : > { %663 = vadd.xlane.f32.xlu0 %v2146_v42  ;;  %625 = vadd.xlane.f32.xlu2 %v2154_v44 }
 0x15d   : > { %659 = vadd.xlane.f32.xlu1 %v2150_v43 }
 0x164   : > { %896 = vadd.xlane.f32.xlu0 %v846_v50  ;;  %631 = vadd.xlane.f32.xlu2 %v2166_v52  ;;  %v850_v50 = vmul.f32 %v1979_v26, %v1979_v26 }
 0x165   : > { %892 = vadd.xlane.f32.xlu1 %v844_v51  ;;  %v2205_v51 = vsel %vm2047_vm2, %v483_v36, 0.0 }
 0x167   : > { %v572_v58 = vpop.xlane.xlu2 %571  ;;  %v576_v59 = vpop.xlane.xlu0 %575 }
 0x168   : > { %v715_v2 = vperm.slane %v572_v58, %v2170_v57  ;;  %v570_v6 = vpop.xlane.xlu1 %569  ;;  %v723_v37 = vperm.slane %v576_v59, %v2189_v24 }
 0x169   : > { %v713_v1 = vperm.slane %v570_v6, %v1887_v54 }
 0x16b   : > { %v717_v4 = vsel %vm716_vm3, %v715_v2, %v713_v1  ;;  %v2210_v2 = vadd.s32 4294967264, %v1887_v54 }
 0x16c   : > { %902 = vadd.xlane.f32.xlu0 %v849_v16  ;;  %637 = vadd.xlane.f32.xlu2 %v2182_v14  ;;  %v855_v16 = vmul.f32 %v1920_v5, %v1920_v5 }
 0x16d   : > { %898 = vadd.xlane.f32.xlu1 %v847_v11  ;;  %v2225_v11 = vsel %vm2047_vm2, %v486_v3, 0.0 }
 0x16f   : > { %v574_v20 = vpop.xlane.xlu2 %573  ;;  %v2191_v25 = vpop.xlane.xlu0 %591 }
 0x170   : > { %v719_v63 = vperm.slane %v574_v20, %v2186_v17  ;;  %v2194_v29 = vpop.xlane.xlu1 %587  ;;  %v2229_v20 = vadd.s32 4294967256, %v1887_v54 }
 0x172   : > { %v721_v41 = vsel %vm720_vm4, %v719_v63, %v717_v4  ;;  %v853_v4 = vmul.f32 %v1930_v7, %v1930_v7  ;;  %v489_v7 = vld [vmem:[%s1871_s28 + $0x158] sm:$0xff] }
 0x173   : > { %v725_v58 = vsel %vm724_vm5, %v723_v37, %v721_v41 }
 0x174   : > { %908 = vadd.xlane.f32.xlu0 %v852_v45  ;;  %643 = vadd.xlane.f32.xlu2 %v2205_v51  ;;  %v858_v45 = vmul.f32 %v1938_v12, %v1938_v12 }
 0x175   : > { %904 = vadd.xlane.f32.xlu1 %v850_v50  ;;  %v856_v50 = vmul.f32 %v1948_v15, %v1948_v15  ;;  %v492_v15 = vld [vmem:[%s1871_s28 + $0x170] sm:$0xff] }
 0x177   : > { %v578_v59 = vpop.xlane.xlu2 %577  ;;  %v2212_v6 = vpop.xlane.xlu0 %597 }
 0x178   : > { %v727_v38 = vperm.slane %v578_v59, %v2210_v2  ;;  %v2215_v26 = vpop.xlane.xlu1 %593  ;;  %v2248_v59 = vadd.s32 4294967248, %v1887_v54 }
 0x17a   : > { %v729_v1 = vsel %vm728_vm6, %v727_v38, %v725_v58  ;;  %v2244_v58 = vsel %vm2047_vm2, %v489_v7, 0.0  ;;  %v2267_v7 = vadd.s32 4294967240, %v1887_v54 }
 0x17c   : > { %914 = vadd.xlane.f32.xlu0 %v855_v16  ;;  %649 = vadd.xlane.f32.xlu2 %v2225_v11 }
 0x17d   : > { %910 = vadd.xlane.f32.xlu1 %v853_v4  ;;  %v861_v4 = vmul.f32 %v1965_v21, %v1965_v21 }
 0x17f   : > { %v580_v63 = vpop.xlane.xlu2 %579  ;;  %v2231_v36 = vpop.xlane.xlu0 %603 }
 0x180   : > { %v731_v5 = vperm.slane %v580_v63, %v2229_v20  ;;  %v2234_v37 = vpop.xlane.xlu1 %599  ;;  %v859_v63 = vmul.f32 %v1970_v22, %v1970_v22 }
 0x182   : > { %v733_v41 = vsel %vm732_vm7, %v731_v5, %v729_v1  ;;  %v2263_v5 = vsel %vm2047_vm2, %v492_v15, 0.0  ;;  %v2282_v15 = vadd.s32 4294967232, %v1887_v54  ;;  %vm2679_vm2 = vcmask 1041409  }
 0x183   : > { %2689 = vst [vmem:[#allocation10_spill] sm:$0xff] %v2263_v5 }
 0x184   : > { %920 = vadd.xlane.f32.xlu0 %v858_v45  ;;  %655 = vadd.xlane.f32.xlu2 %v2244_v58 }
 0x185   : > { %916 = vadd.xlane.f32.xlu1 %v856_v50 }
 0x187   : > { %v582_v38 = vpop.xlane.xlu2 %581  ;;  %v2250_v3 = vpop.xlane.xlu0 %609 }
 0x188   : > { %v735_v12 = vperm.slane %v582_v38, %v2248_v59  ;;  %v2253_v1 = vpop.xlane.xlu1 %605  ;;  %v845_v38 = vmul.f32 %v1906_v0, %v1906_v0 }
 0x18a   : > { %v737_v16 = vsel %vm736_vm8, %v735_v12, %v733_v41  ;;  %v862_v12 = vmul.f32 %v1988_v28, %v1988_v28 }
 0x18c   : > { %926 = vadd.xlane.f32.xlu0 %v861_v4  ;;  %661 = vadd.xlane.f32.xlu2 %v2263_v5  ;;  %v2285_v4 = vadd.s32 4294967224, %v1887_v54  ;;  %v868_v5 = vmul.f32 %v2024_v40, %v2024_v40 }
 0x18d   : > { %922 = vadd.xlane.f32.xlu1 %v859_v63 }
 0x18e   : > { %v747_v0 = vperm.slane %v2194_v29, %v2285_v4  ;;  %v2306_v29 = vadd.s32 4294967200, %v1887_v54 }
 0x18f   : > { %v584_v45 = vpop.xlane.xlu2 %583  ;;  %v2269_v41 = vpop.xlane.xlu0 %615 }
 0x190   : > { %v739_v21 = vperm.slane %v584_v45, %v2267_v7  ;;  %v2272_v50 = vpop.xlane.xlu1 %611 }
 0x192   : > { %v741_v22 = vsel %vm740_vm9, %v739_v21, %v737_v16  ;;  %v867_v21 = vmul.f32 %v2001_v33, %v2001_v33 }
 0x194   : > { %932 = vadd.xlane.f32.xlu0 %v864_v49  ;;  %894 = vadd.xlane.f32.xlu2 %v845_v38  ;;  %v848_v49 = vmul.f32 %v1942_v13, %v1942_v13  ;;  %v865_v38 = vmul.f32 %v2006_v34, %v2006_v34 }
 0x195   : > { %928 = vadd.xlane.f32.xlu1 %v862_v12 }
 0x197   : > { %v586_v16 = vpop.xlane.xlu2 %585  ;;  %v2290_v45 = vpop.xlane.xlu0 %621 }
 0x198   : > { %v743_v63 = vperm.slane %v586_v16, %v2282_v15  ;;  %v2288_v27 = vpop.xlane.xlu1 %617  ;;  %v2303_v16 = vadd.s32 4294967208, %v1887_v54 }
 0x19a   : > { %v745_v28 = vsel %vm744_vm10, %v743_v63, %v741_v22  ;;  %v2309_v22 = vadd.s32 4294967216, %v1887_v54  ;;  %v755_v63 = vperm.slane %v2191_v25, %v2303_v16 }
 0x19b   : > { %v749_v12 = vsel %vm748_vm11, %v747_v0, %v745_v28  ;;  %v759_v0 = vperm.slane %v2215_v26, %v2306_v29  ;;  %v2330_v26 = vadd.s32 4294967184, %v1887_v54 }
 0x19c   : > { %938 = vadd.xlane.f32.xlu0 %v867_v21  ;;  %900 = vadd.xlane.f32.xlu2 %v848_v49  ;;  %v870_v49 = vmul.f32 %v2019_v39, %v2019_v39  ;;  %v2336_v39 = vadd.s32 4294967192, %v1887_v54 }
 0x19d   : > { %934 = vadd.xlane.f32.xlu1 %v865_v38  ;;  %v851_v38 = vmul.f32 %v1997_v32, %v1997_v32 }
 0x19f   : > { %v590_v33 = vpop.xlane.xlu2 %589  ;;  %v2319_v21 = vpop.xlane.xlu0 %627 }
 0x1a0   : > { %v751_v13 = vperm.slane %v590_v33, %v2309_v22  ;;  %v2312_v34 = vpop.xlane.xlu1 %623 }
 0x1a2   : > { %v753_v28 = vsel %vm752_vm12, %v751_v13, %v749_v12  ;;  %v2333_v12 = vadd.s32 4294967176, %v1887_v54 }
 0x1a3   : > { %v757_v33 = vsel %vm756_vm13, %v755_v63, %v753_v28  ;;  %v767_v63 = vperm.slane %v2212_v6, %v2330_v26  ;;  %v877_v28 = vmul.f32 %v2078_v61, %v2078_v61  ;;  %v775_v61 = vperm.slane %v2231_v36, %v2170_v57 }
 0x1a4   : > { %944 = vadd.xlane.f32.xlu0 %v870_v49  ;;  %906 = vadd.xlane.f32.xlu2 %v851_v38  ;;  %v761_v25 = vsel %vm760_vm14, %v759_v0, %v757_v33  ;;  %v854_v49 = vmul.f32 %v2033_v46, %v2033_v46  ;;  %v871_v33 = vmul.f32 %v2042_v48, %v2042_v48 }
 0x1a5   : > { %940 = vadd.xlane.f32.xlu1 %v868_v5  ;;  %v771_v5 = vperm.slane %v2234_v37, %v2333_v12  ;;  %v880_v48 = vmul.f32 %v2096_v9, %v2096_v9  ;;  %v860_v9 = vmul.f32 %v2082_v62, %v2082_v62 }
 0x1a7   : > { %v596_v32 = vpop.xlane.xlu2 %595 }
 0x1a8   : > { %v763_v13 = vperm.slane %v596_v32, %v2336_v39  ;;  %v2339_v40 = vpop.xlane.xlu1 %629  ;;  %v2353_v32 = vpop.xlane.xlu0 %633 }
 0x1aa   : > { %v765_v0 = vsel %vm764_vm15, %v763_v13, %v761_v25 }
 0x1ab   : > { %v769_v38 = vsel %vm768_vm0, %v767_v63, %v765_v0  ;;  %v857_v63 = vmul.f32 %v2060_v55, %v2060_v55  ;;  %v777_v55 = vperm.slane %v2253_v1, %v2186_v17 }
 0x1ac   : > { %958 = vadd.xlane.f32.xlu0 %v877_v28  ;;  %912 = vadd.xlane.f32.xlu2 %v854_v49  ;;  %v2356_v6 = vsel %vm772_vm1, %v771_v5, %v769_v38  ;;  %v878_v5 = vmul.f32 %v2182_v14, %v2182_v14  ;;  %v883_v38 = vmul.f32 %v2114_v19, %v2114_v19 }
 0x1ad   : > { %946 = vadd.xlane.f32.xlu1 %v871_v33  ;;  %v881_v14 = vmul.f32 %v2205_v51, %v2205_v51  ;;  %v783_v51 = vperm.slane %v2272_v50, %v2229_v20  ;;  %v787_v50 = vperm.slane %v2269_v41, %v2267_v7  ;;  %v872_v41 = vmul.f32 %v2154_v44, %v2154_v44 }
 0x1af   : > { %v602_v37 = vpop.xlane.xlu2 %601 }
 0x1b0   : > { %v2360_v25 = vpop.xlane.xlu1 %635  ;;  %v774_v46 = vperm.slane %v602_v37, %v1887_v54  ;;  %v2370_v0 = vpop.xlane.xlu0 %639 }
 0x1b2   : > { %v776_v13 = vsel %vm716_vm3, %v775_v61, %v774_v46  ;;  %v781_v61 = vperm.slane %v2250_v3, %v2210_v2  ;;  %v884_v3 = vmul.f32 %v2225_v11, %v2225_v11  ;;  %v873_v11 = vmul.f32 %v2037_v47, %v2037_v47 }
 0x1b3   : > { %v778_v33 = vsel %vm720_vm4, %v777_v55, %v776_v13  ;;  %v886_v13 = vmul.f32 %v2132_v31, %v2132_v31  ;;  %v866_v55 = vmul.f32 %v2118_v23, %v2118_v23  ;;  %v795_v23 = vperm.slane %v2312_v34, %v2303_v16 }
 0x1b4   : > { %964 = vadd.xlane.f32.xlu0 %v880_v48  ;;  %918 = vadd.xlane.f32.xlu2 %v857_v63  ;;  %v863_v63 = vmul.f32 %v2100_v10, %v2100_v10  ;;  %v789_v10 = vperm.slane %v2288_v27, %v2282_v15  ;;  %v793_v27 = vperm.slane %v2290_v45, %v2309_v22 }
 0x1b5   : > { %960 = vadd.xlane.f32.xlu1 %v878_v5  ;;  %v888_v45 = vmul.f32 %v2128_v30, %v2128_v30 }
 0x1b7   : > { %v608_v36 = vpop.xlane.xlu2 %607 }
 0x1b8   : > { %v2372_v28 = vpop.xlane.xlu1 %641  ;;  %v779_v49 = vperm.slane %v608_v36, %v2189_v24  ;;  %v2387_v46 = vpop.xlane.xlu0 %645 }
 0x1ba   : > { %v780_v37 = vsel %vm724_vm5, %v779_v49, %v778_v33 }
 0x1bb   : > { %v782_v62 = vsel %vm728_vm6, %v781_v61, %v780_v37 }
 0x1bc   : > { %970 = vadd.xlane.f32.xlu0 %v883_v38  ;;  %924 = vadd.xlane.f32.xlu2 %v860_v9  ;;  %v784_v5 = vsel %vm732_vm7, %v783_v51, %v782_v62  ;;  %v889_v62 = vmul.f32 %v2150_v43, %v2150_v43 }
 0x1bd   : > { %966 = vadd.xlane.f32.xlu1 %v881_v14 }
 0x1bf   : > { %v614_v19 = vpop.xlane.xlu2 %613 }
 0x1c0   : > { %v785_v1 = vperm.slane %v614_v19, %v2248_v59  ;;  %v2393_v48 = vpop.xlane.xlu1 %647  ;;  %v2409_v9 = vpop.xlane.xlu0 %651 }
 0x1c2   : > { %v786_v36 = vsel %vm736_vm8, %v785_v1, %v784_v5  ;;  %v869_v1 = vmul.f32 %v2136_v35, %v2136_v35  ;;  %v801_v35 = vperm.slane %v2339_v40, %v2330_v26  ;;  %v875_v40 = vmul.f32 %v2166_v52, %v2166_v52 }
 0x1c3   : > { %v788_v38 = vsel %vm740_vm9, %v787_v50, %v786_v36  ;;  %v891_v36 = vmul.f32 %v2146_v42, %v2146_v42  ;;  %v876_v50 = vmul.f32 %v2056_v53, %v2056_v53  ;;  %v806_v42 = vperm.slane %v2360_v25, %v2170_v57 }
 0x1c4   : > { %976 = vadd.xlane.f32.xlu0 %v886_v13  ;;  %930 = vadd.xlane.f32.xlu2 %v863_v63  ;;  %v790_v14 = vsel %vm744_vm10, %v789_v10, %v788_v38  ;;  %v799_v13 = vperm.slane %v2319_v21, %v2336_v39  ;;  %v812_v25 = vperm.slane %v2372_v28, %v2210_v2 }
 0x1c5   : > { %972 = vadd.xlane.f32.xlu1 %v884_v3  ;;  %v818_v28 = vperm.slane %v2393_v48, %v2267_v7 }
 0x1c7   : > { %v620_v49 = vpop.xlane.xlu2 %619 }
 0x1c8   : > { %v791_v31 = vperm.slane %v620_v49, %v2285_v4  ;;  %v2418_v33 = vpop.xlane.xlu1 %653  ;;  %v2437_v63 = vpop.xlane.xlu0 %657 }
 0x1ca   : > { %v792_v37 = vsel %vm748_vm11, %v791_v31, %v790_v14  ;;  %v810_v14 = vperm.slane %v2370_v0, %v2189_v24  ;;  %v816_v0 = vperm.slane %v2387_v46, %v2248_v59  ;;  %v822_v46 = vperm.slane %v2409_v9, %v2285_v4 }
 0x1cb   : > { %v794_v47 = vsel %vm752_vm12, %v793_v27, %v792_v37 }
 0x1cc   : > { %950 = vadd.xlane.f32.xlu0 %v873_v11  ;;  %936 = vadd.xlane.f32.xlu2 %v866_v55  ;;  %v796_v44 = vsel %vm756_vm13, %v795_v23, %v794_v47  ;;  %v805_v11 = vperm.slane %v2353_v32, %v1887_v54 }
 0x1cd   : > { %948 = vadd.xlane.f32.xlu1 %v872_v41 }
 0x1ce   : > { %v807_v52 = vsel %vm716_vm3, %v806_v42, %v805_v11  ;;  %v568_v42 = vld [vmem:[#allocation2] sm:$0x7] }
 0x1cf   : > { %v626_v61 = vpop.xlane.xlu2 %625 }
 0x1d0   : > { %v797_v19 = vperm.slane %v626_v61, %v2306_v29  ;;  %v2439_v34 = vpop.xlane.xlu1 %659  ;;  %v664_v38 = vpop.xlane.xlu0 %663 }
 0x1d1   : > { %v834_v11 = vperm.slane %v664_v38, %v2333_v12 }
 0x1d2   : > { %v798_v51 = vsel %vm760_vm14, %v797_v19, %v796_v44 }
 0x1d3   : > { %v800_v43 = vsel %vm764_vm15, %v799_v13, %v798_v51 }
 0x1d4   : > { %982 = vadd.xlane.f32.xlu0 %v889_v62  ;;  %942 = vadd.xlane.f32.xlu2 %v869_v1  ;;  %v802_v30 = vsel %vm768_vm0, %v801_v35, %v800_v43 }
 0x1d5   : > { %980 = vadd.xlane.f32.xlu1 %v888_v45 }
 0x1d7   : > { %v632_v3 = vpop.xlane.xlu2 %631 }
 0x1d8   : > { %v803_v5 = vperm.slane %v632_v3, %v2333_v12  ;;  %v2455_v10 = vpop.xlane.xlu1 %892  ;;  %v897_v37 = vpop.xlane.xlu0 %896  ;;  %v824_v3 = vperm.slane %v2418_v33, %v2309_v22  ;;  %v830_v33 = vperm.slane %v2439_v34, %v2336_v39 }
 0x1d9   : > { %v1036_v38 = vperm.slane %v2455_v10, %v1887_v54 }
 0x1da   : > { %v804_v21 = vsel %vm772_vm1, %v803_v5, %v802_v30 }
 0x1db   : > { %v837_v49 = vsel %vm2679_vm2, %v804_v21, %v2356_v6  ;;  %v879_v6 = vmul.f32 %v2074_v60, %v2074_v60  ;;  %v882_v60 = vmul.f32 %v2092_v8, %v2092_v8  ;;  %v885_v8 = vmul.f32 %v2110_v18, %v2110_v18 }
 0x1dc   : > { %986 = vadd.xlane.f32.xlu0 %v891_v36  ;;  %956 = vadd.xlane.f32.xlu2 %v876_v50  ;;  %v887_v18 = vmul.f32 %v2244_v58, %v2244_v58  ;;  %v828_v21 = vperm.slane %v2437_v63, %v2306_v29  ;;  %vm838_vm2 = vcmask 1042434   ;;  %v874_v63 = vmul.f32 %v2065_v56, %v2065_v56 }
 0x1dd   : > { %954 = vadd.xlane.f32.xlu1 %v875_v40 }
 0x1df   : > { %v638_v31 = vpop.xlane.xlu2 %637 }
 0x1e0   : > { %v808_v53 = vperm.slane %v638_v31, %v2186_v17  ;;  %v899_v47 = vpop.xlane.xlu1 %898  ;;  %v903_v1 = vpop.xlane.xlu0 %902 }
 0x1e2   : > { %v809_v55 = vsel %vm720_vm4, %v808_v53, %v807_v52 }
 0x1e3   : > { %v811_v32 = vsel %vm724_vm5, %v810_v14, %v809_v55 }
 0x1e4   : > { %962 = vadd.xlane.f32.xlu2 %v879_v6  ;;  %v813_v61 = vsel %vm728_vm6, %v812_v25, %v811_v32  ;;  %v1041_v25 = vperm.slane %v899_v47, %v2189_v24 }
 0x1e7   : > { %v644_v41 = vpop.xlane.xlu2 %643 }
 0x1e8   : > { %v814_v27 = vperm.slane %v644_v41, %v2229_v20  ;;  %v905_v45 = vpop.xlane.xlu1 %904  ;;  %v909_v36 = vpop.xlane.xlu0 %908 }
 0x1ea   : > { %v815_v23 = vsel %vm732_vm7, %v814_v27, %v813_v61  ;;  %v1039_v27 = vperm.slane %v897_v37, %v2186_v17  ;;  %v1047_v37 = vperm.slane %v905_v45, %v2248_v59 }
 0x1eb   : > { %v817_v44 = vsel %vm736_vm8, %v816_v0, %v815_v23 }
 0x1ec   : > { %968 = vadd.xlane.f32.xlu2 %v882_v60  ;;  %v819_v51 = vsel %vm740_vm9, %v818_v28, %v817_v44  ;;  %v2690_v60 = vld [vmem:[#allocation10_spill] sm:$0xff]  ;;  %v1045_v44 = vperm.slane %v903_v1, %v2229_v20 }
 0x1ef   : > { %v650_v19 = vpop.xlane.xlu2 %649 }
 0x1f0   : > { %v820_v62 = vperm.slane %v650_v19, %v2282_v15  ;;  %v911_v9 = vpop.xlane.xlu1 %910  ;;  %v915_v55 = vpop.xlane.xlu0 %914 }
 0x1f2   : > { %v821_v13 = vsel %vm744_vm10, %v820_v62, %v819_v51 }
 0x1f3   : > { %v823_v43 = vsel %vm748_vm11, %v822_v46, %v821_v13  ;;  %v1051_v46 = vperm.slane %v909_v36, %v2282_v15 }
 0x1f4   : > { %974 = vadd.xlane.f32.xlu2 %v885_v8  ;;  %v825_v5 = vsel %vm752_vm12, %v824_v3, %v823_v43  ;;  %v1053_v43 = vperm.slane %v911_v9, %v2285_v4 }
 0x1f7   : > { %v656_v35 = vpop.xlane.xlu2 %655 }
 0x1f8   : > { %v826_v48 = vperm.slane %v656_v35, %v2303_v16  ;;  %v917_v41 = vpop.xlane.xlu1 %916  ;;  %v921_v19 = vpop.xlane.xlu0 %920 }
 0x1fa   : > { %v827_v30 = vsel %vm756_vm13, %v826_v48, %v825_v5 }
 0x1fb   : > { %v829_v50 = vsel %vm760_vm14, %v828_v21, %v827_v30  ;;  %v1057_v30 = vperm.slane %v915_v55, %v2303_v16  ;;  %v1059_v21 = vperm.slane %v917_v41, %v2306_v29 }
 0x1fc   : > { %978 = vadd.xlane.f32.xlu2 %v887_v18  ;;  %v831_v58 = vsel %vm764_vm15, %v830_v33, %v829_v50 }
 0x1ff   : > { %v662_v40 = vpop.xlane.xlu2 %661 }
 0x200   : > { %v832_v31 = vperm.slane %v662_v40, %v2330_v26  ;;  %v923_v62 = vpop.xlane.xlu1 %922  ;;  %v927_v35 = vpop.xlane.xlu0 %926 }
 0x201   : > { %v1068_v55 = vperm.slane %v927_v35, %v2170_v57 }
 0x202   : > { %v833_v53 = vsel %vm768_vm0, %v832_v31, %v831_v58  ;;  %v1063_v58 = vperm.slane %v921_v19, %v2330_v26 }
 0x203   : > { %v835_v6 = vsel %vm772_vm1, %v834_v11, %v833_v53 }
 0x204   : > { %v839_v52 = vsel %vm838_vm2, %v835_v6, %v837_v49  ;;  %952 = vadd.xlane.f32.xlu2 %v874_v63  ;;  %v890_v49 = vmul.f32 %v2690_v60, %v2690_v60 }
 0x205   : > { %v841_v34 = vadd.f32 %v839_v52, %v568_v42  ;;  %v1065_v42 = vperm.slane %v923_v62, %v2333_v12 }
 0x207   : > { %842 = vst [vmem:[#allocation2] sm:$0x7] %v841_v34  ;;  %v895_v14 = vpop.xlane.xlu2 %894 }
 0x208   : > { %v1037_v32 = vperm.slane %v895_v14, %v2170_v57  ;;  %v929_v45 = vpop.xlane.xlu1 %928  ;;  %v933_v9 = vpop.xlane.xlu0 %932 }
 0x20a   : > { %v1038_v56 = vsel %vm716_vm3, %v1037_v32, %v1036_v38 }
 0x20b   : > { %v1040_v61 = vsel %vm720_vm4, %v1039_v27, %v1038_v56 }
 0x20c   : > { %984 = vadd.xlane.f32.xlu2 %v890_v49  ;;  %v1042_v23 = vsel %vm724_vm5, %v1041_v25, %v1040_v61 }
 0x20f   : > { %v901_v0 = vpop.xlane.xlu2 %900 }
 0x210   : > { %v1043_v10 = vperm.slane %v901_v0, %v2210_v2  ;;  %v935_v40 = vpop.xlane.xlu1 %934  ;;  %v939_v52 = vpop.xlane.xlu0 %938 }
 0x212   : > { %v1044_v47 = vsel %vm728_vm6, %v1043_v10, %v1042_v23 }
 0x213   : > { %v1046_v28 = vsel %vm732_vm7, %v1045_v44, %v1044_v47  ;;  %v1070_v47 = vperm.slane %v929_v45, %v2186_v17 }
 0x214   : > { %v1048_v8 = vsel %vm736_vm8, %v1047_v37, %v1046_v28 }
 0x217   : > { %v907_v51 = vpop.xlane.xlu2 %906 }
 0x218   : > { %v1049_v13 = vperm.slane %v907_v51, %v2267_v7  ;;  %v941_v14 = vpop.xlane.xlu1 %940  ;;  %v945_v27 = vpop.xlane.xlu0 %944 }
 0x21a   : > { %v1050_v3 = vsel %vm740_vm9, %v1049_v13, %v1048_v8  ;;  %v1074_v13 = vperm.slane %v933_v9, %v2210_v2 }
 0x21b   : > { %v1052_v1 = vsel %vm744_vm10, %v1051_v46, %v1050_v3 }
 0x21c   : > { %v1054_v48 = vsel %vm748_vm11, %v1053_v43, %v1052_v1 }
 0x21f   : > { %v913_v5 = vpop.xlane.xlu2 %912 }
 0x220   : > { %v1055_v18 = vperm.slane %v913_v5, %v2309_v22  ;;  %v947_v25 = vpop.xlane.xlu1 %946  ;;  %v959_v60 = vpop.xlane.xlu0 %958 }
 0x221   : > { %v1099_v5 = vperm.slane %v959_v60, %v2170_v57 }
 0x222   : > { %v1056_v50 = vsel %vm752_vm12, %v1055_v18, %v1054_v48  ;;  %v1076_v48 = vperm.slane %v935_v40, %v2229_v20 }
 0x223   : > { %v1058_v36 = vsel %vm756_vm13, %v1057_v30, %v1056_v50 }
 0x224   : > { %v1060_v33 = vsel %vm760_vm14, %v1059_v21, %v1058_v36 }
 0x227   : > { %v919_v31 = vpop.xlane.xlu2 %918 }
 0x228   : > { %v1061_v11 = vperm.slane %v919_v31, %v2336_v39  ;;  %v961_v49 = vpop.xlane.xlu1 %960  ;;  %v965_v23 = vpop.xlane.xlu0 %964  ;;  %v1082_v31 = vperm.slane %v941_v14, %v2282_v15 }
 0x229   : > { %v1101_v21 = vperm.slane %v961_v49, %v2186_v17 }
 0x22a   : > { %v1062_v53 = vsel %vm764_vm15, %v1061_v11, %v1060_v33  ;;  %v1105_v11 = vperm.slane %v965_v23, %v2210_v2 }
 0x22b   : > { %v1064_v63 = vsel %vm768_vm0, %v1063_v58, %v1062_v53 }
 0x22c   : > { %v2543_v6 = vsel %vm772_vm1, %v1065_v42, %v1064_v63 }
 0x22f   : > { %v925_v34 = vpop.xlane.xlu2 %924 }
 0x230   : > { %v1067_v38 = vperm.slane %v925_v34, %v1887_v54  ;;  %v967_v0 = vpop.xlane.xlu1 %966  ;;  %v971_v10 = vpop.xlane.xlu0 %970  ;;  %v1086_v34 = vperm.slane %v945_v27, %v2309_v22 }
 0x231   : > { %v1107_v63 = vperm.slane %v967_v0, %v2229_v20 }
 0x232   : > { %v1069_v41 = vsel %vm716_vm3, %v1068_v55, %v1067_v38 }
 0x233   : > { %v1071_v28 = vsel %vm720_vm4, %v1070_v47, %v1069_v41  ;;  %v1088_v41 = vperm.slane %v947_v25, %v2303_v16 }
 0x237   : > { %v931_v32 = vpop.xlane.xlu2 %930 }
 0x238   : > { %v973_v37 = vpop.xlane.xlu1 %972  ;;  %v1072_v62 = vperm.slane %v931_v32, %v2189_v24  ;;  %v977_v46 = vpop.xlane.xlu0 %976  ;;  %v1111_v32 = vperm.slane %v971_v10, %v2267_v7 }
 0x239   : > { %v1113_v60 = vperm.slane %v973_v37, %v2282_v15 }
 0x23a   : > { %v1073_v8 = vsel %vm724_vm5, %v1072_v62, %v1071_v28 }
 0x23b   : > { %v1075_v35 = vsel %vm728_vm6, %v1074_v13, %v1073_v8 }
 0x23c   : > { %v1077_v45 = vsel %vm732_vm7, %v1076_v48, %v1075_v35  ;;  %v843_v48 = vld [vmem:[#allocation3] sm:$0x7] }
 0x23f   : > { %v937_v56 = vpop.xlane.xlu2 %936 }
 0x240   : > { %v949_v3 = vpop.xlane.xlu1 %948  ;;  %v1078_v1 = vperm.slane %v937_v56, %v2248_v59 }
 0x241   : > { %v1090_v27 = vperm.slane %v949_v3, %v2306_v29 }
 0x242   : > { %v1079_v50 = vsel %vm736_vm8, %v1078_v1, %v1077_v45 }
 0x247   : > { %v943_v61 = vpop.xlane.xlu2 %942 }
 0x248   : > { %v1084_v40 = vperm.slane %v943_v61, %v2285_v4  ;;  %v981_v58 = vpop.xlane.xlu1 %980 }
 0x24f   : > { %v957_v19 = vpop.xlane.xlu2 %956 }
 0x250   : > { %v1098_v43 = vperm.slane %v957_v19, %v1887_v54  ;;  %v1080_v54 = vperm.slane %v939_v52, %v2267_v7  ;;  %v955_v61 = vpop.xlane.xlu1 %954 }
 0x251   : > { %v1096_v15 = vperm.slane %v955_v61, %v2333_v12 }
 0x252   : > { %v1100_v18 = vsel %vm716_vm3, %v1099_v5, %v1098_v43  ;;  %v1081_v33 = vsel %vm740_vm9, %v1080_v54, %v1079_v50  ;;  %vm2691_vm3 = vcmask 1041409  }
 0x253   : > { %v1102_v9 = vsel %vm720_vm4, %v1101_v21, %v1100_v18  ;;  %v1083_v17 = vsel %vm744_vm10, %v1082_v31, %v1081_v33 }
 0x254   : > { %v1085_v52 = vsel %vm748_vm11, %v1084_v40, %v1083_v17 }
 0x255   : > { %v1087_v14 = vsel %vm752_vm12, %v1086_v34, %v1085_v52 }
 0x256   : > { %v1089_v56 = vsel %vm756_vm13, %v1088_v41, %v1087_v14 }
 0x257   : > { %v963_v44 = vpop.xlane.xlu2 %962  ;;  %v1091_v0 = vsel %vm760_vm14, %v1090_v27, %v1089_v56 }
 0x258   : > { %v1103_v30 = vperm.slane %v963_v44, %v2189_v24  ;;  %v951_v24 = vpop.xlane.xlu0 %950  ;;  %v1117_v44 = vperm.slane %v977_v46, %v2309_v22 }
 0x259   : > { %v1092_v25 = vperm.slane %v951_v24, %v2336_v39 }
 0x25a   : > { %v1104_v57 = vsel %vm724_vm5, %v1103_v30, %v1102_v9 }
 0x25b   : > { %v1106_v42 = vsel %vm728_vm6, %v1105_v11, %v1104_v57  ;;  %v1093_v37 = vsel %vm764_vm15, %v1092_v25, %v1091_v0 }
 0x25c   : > { %v1108_v55 = vsel %vm732_vm7, %v1107_v63, %v1106_v42 }
 0x25f   : > { %v969_v51 = vpop.xlane.xlu2 %968 }
 0x260   : > { %v1109_v53 = vperm.slane %v969_v51, %v2248_v59  ;;  %v983_v49 = vpop.xlane.xlu0 %982  ;;  %v1121_v51 = vperm.slane %v981_v58, %v2306_v29 }
 0x261   : > { %v1123_v46 = vperm.slane %v983_v49, %v2336_v39 }
 0x262   : > { %v1110_v2 = vsel %vm736_vm8, %v1109_v53, %v1108_v55 }
 0x263   : > { %v1112_v59 = vsel %vm740_vm9, %v1111_v32, %v1110_v2 }
 0x264   : > { %v1114_v23 = vsel %vm744_vm10, %v1113_v60, %v1112_v59 }
 0x267   : > { %v975_v36 = vpop.xlane.xlu2 %974 }
 0x268   : > { %v1115_v20 = vperm.slane %v975_v36, %v2285_v4  ;;  %v987_v22 = vpop.xlane.xlu0 %986 }
 0x269   : > { %v1127_v3 = vperm.slane %v987_v22, %v2333_v12 }
 0x26a   : > { %v1116_v7 = vsel %vm748_vm11, %v1115_v20, %v1114_v23 }
 0x26b   : > { %v1118_v62 = vsel %vm752_vm12, %v1117_v44, %v1116_v7 }
 0x26f   : > { %v979_v38 = vpop.xlane.xlu2 %978 }
 0x270   : > { %v1119_v19 = vperm.slane %v979_v38, %v2303_v16 }
 0x272   : > { %v1120_v28 = vsel %vm756_vm13, %v1119_v19, %v1118_v62 }
 0x273   : > { %v1122_v13 = vsel %vm760_vm14, %v1121_v51, %v1120_v28 }
 0x274   : > { %v1124_v1 = vsel %vm764_vm15, %v1123_v46, %v1122_v13 }
 0x277   : > { %v953_v10 = vpop.xlane.xlu2 %952 }
 0x278   : > { %v1094_v4 = vperm.slane %v953_v10, %v2330_v26 }
 0x27a   : > { %v1095_v47 = vsel %vm768_vm0, %v1094_v4, %v1093_v37 }
 0x27b   : > { %v1097_v8 = vsel %vm772_vm1, %v1096_v15, %v1095_v47 }
 0x27c   : > { %v1129_v16 = vsel %vm2691_vm3, %v1097_v8, %v2543_v6 }
 0x27f   : > { %v985_v43 = vpop.xlane.xlu2 %984 }
 0x280   : > { %v1125_v35 = vperm.slane %v985_v43, %v2330_v26 }
 0x282   : > { %v1126_v5 = vsel %vm768_vm0, %v1125_v35, %v1124_v1 }
 0x283   : > { %v1128_v29 = vsel %vm772_vm1, %v1127_v3, %v1126_v5 }
 0x284   : > { %v1130_v45 = vsel %vm838_vm2, %v1128_v29, %v1129_v16 }
 0x285   : > { %v1132_v6 = vadd.f32 %v1130_v45, %v843_v48 }
 0x287   : > { %1133 = vst [vmem:[#allocation3] sm:$0x7] %v1132_v6 }
 0x288 PF: > { %p1401_p8 = scmp.ne.s32.totalorder %s1610_s19, 2 }
 0x28a   : > { %1137 = sbr.rel (%p1401_p8) target bundleno = 850 (0x352), region = 78 }
 0x28f   : > { %v1141_v26 = vld [vmem:[%s2675_s1 + $0x2] sm:$0x1]  ;;  %v1139_v12 = vld [vmem:[%s2675_s1] sm:$0x1]  ;;  %v1630_v39 = vmov 0   ;;  %vm1264_vm14 = vcmask 1040384  }
 0x290   : > { %1508 = vset.pattern.permute.xlu1 %v1630_v39  ;;  %1507 = vset.pattern.permute.xlu0 %v1630_v39  ;;  %v1144_v18 = vcvt.s32.f32 %v1141_v26  ;;  %v1142_v30 = vcvt.s32.f32 %v1139_v12  ;;  %v1140_v21 = vld [vmem:[%s2675_s1 + $0x1] sm:$0x1]  ;;  %v1138_v20 = vld [vmem:[#allocation2] sm:$0x7]  ;;  %v1188_v4 = vld [vmem:[#allocation3] sm:$0x7] }
 0x291   : > { %v1143_v50 = vcvt.s32.f32 %v1140_v21  ;;  %1509 = vset.pattern.permute.xlu2 %v1630_v39 }
 0x292   : > { %1159 = vperm.xlu1 %1508, %v1144_v18   ;;  %1147 = vperm.xlu0 %1507, %v1142_v30   ;;  %v1402_v36 = vadd.f32 -1.0, %v1142_v30  ;;  %v1404_v9 = vadd.f32 -1.0, %v1144_v18 }
 0x293   : > { %v1403_v54 = vadd.f32 -1.0, %v1143_v50 }
 0x295   : > { %1202 = vperm.xlu2 %1509, %v1403_v54  }
 0x29a   : > { %1153 = vperm.xlu0 %1507, %v1143_v50   ;;  %1196 = vperm.xlu1 %1508, %v1402_v36  }
 0x29d   : > { %1208 = vperm.xlu2 %1509, %v1404_v9  }
 0x2ef   : > { %v1203_v11 = vpop.permute.xlu2 %1202 }
 0x2f0   : > { %v1205_v53 = vperm.slane %v1203_v11, 0 }
 0x2f7   : > { %v1209_v17 = vpop.permute.xlu2 %1208 }
 0x2f8   : > { %v1211_v63 = vperm.slane %v1209_v17, 0 }
 0x304   : > { %v1160_v33 = vpop.permute.xlu1 %1159  ;;  %v1148_v40 = vpop.permute.xlu0 %1147 }
 0x305   : > { %v1162_v57 = vperm.slane %v1160_v33, 0  ;;  %v1150_v31 = vperm.slane %v1148_v40, 0 }
 0x307   : > { %1170 = vst [vmem:[#allocation1 + $0x2] ss:$9 sm:$0xff] %v1162_v57 }
 0x308   : > { %1166 = vst [vmem:[#allocation1] ss:$9 sm:$0xff] %v1150_v31 }
 0x30c   : > { %v1154_v24 = vpop.permute.xlu0 %1153  ;;  %v1197_v42 = vpop.permute.xlu1 %1196 }
 0x30d   : > { %v1156_v58 = vperm.slane %v1154_v24, 0  ;;  %v1199_v34 = vperm.slane %v1197_v42, 0 }
 0x30f   : > { %1168 = vst [vmem:[#allocation1 + $0x1] ss:$9 sm:$0xff] %v1156_v58 }
 0x316   : > { %v1171_v52 = vld [vmem:[#allocation1] sm:$0xff] }
 0x317   : > { %1510 = vrcp.f32 %v1171_v52  ;;  %1217 = vst [vmem:[#allocation1 + $0x1] ss:$9 sm:$0xff] %v1205_v53  ;;  %v1184_v41 = vand.u32 2147483648, %v1171_v52  ;;  %v1182_v56 = vand.u32 2147483647, %v1171_v52  ;;  %vm1178_vm5 = vweird.f32 %v1171_v52 }
 0x318   : > { %1219 = vst [vmem:[#allocation1 + $0x2] ss:$9 sm:$0xff] %v1211_v63 }
 0x319   : > { %1215 = vst [vmem:[#allocation1] ss:$9 sm:$0xff] %v1199_v34  ;;  %v1185_v60 = vor.u32 1.1754944e-38, %v1184_v41  ;;  %vm1183_vm7 = vcmp.eq.f32.partialorder %v1182_v56, 8.507059e+37 }
 0x31d   : > { %v1511_v55 = vpop.eup %1510 }
 0x31e   : > { %v1174_v38 = vmul.f32 %v1511_v55, %v1171_v52  ;;  %vm1179_vm4 = vweird.f32 %v1511_v55 }
 0x31f   : > { %vm1180_vm6 = vmor %vm1178_vm5, %vm1179_vm4 }
 0x320   : > { %v1175_v14 = vsub.f32 1.0, %v1174_v38  ;;  %v1220_v2 = vld [vmem:[#allocation1] sm:$0xff] }
 0x321   : > { %1512 = vrcp.f32 %v1220_v2  ;;  %v1233_v7 = vand.u32 2147483648, %v1220_v2  ;;  %v1231_v44 = vand.u32 2147483647, %v1220_v2  ;;  %vm1227_vm9 = vweird.f32 %v1220_v2 }
 0x322   : > { %v1176_v32 = vmul.f32 %v1511_v55, %v1175_v14 }
 0x323   : > { %v1234_v37 = vor.u32 1.1754944e-38, %v1233_v7  ;;  %vm1232_vm11 = vcmp.eq.f32.partialorder %v1231_v44, 8.507059e+37 }
 0x324   : > { %v1177_v59 = vadd.f32 %v1511_v55, %v1176_v32 }
 0x326   : > { %v1181_v27 = vsel %vm1180_vm6, %v1511_v55, %v1177_v59 }
 0x327   : > { %v1513_v49 = vpop.eup %1512  ;;  %v1186_v61 = vsel %vm1183_vm7, %v1185_v60, %v1181_v27 }
 0x328   : > { %v1187_v23 = vmul.f32 %v1186_v61, %v1138_v20  ;;  %v1223_v0 = vmul.f32 %v1513_v49, %v1220_v2  ;;  %vm1228_vm8 = vweird.f32 %v1513_v49 }
 0x329   : > { %vm1229_vm10 = vmor %vm1227_vm9, %vm1228_vm8 }
 0x32a   : > { %v1224_v25 = vsub.f32 1.0, %v1223_v0  ;;  %v1189_v19 = vmul.f32 %v1187_v23, %v1138_v20  ;;  %v1251_v26 = vrot.slane %v1187_v23, 1  ;;  %v1252_v12 = vrot.slane %v1187_v23, 2 }
 0x32c   : > { %v1225_v10 = vmul.f32 %v1513_v49, %v1224_v25  ;;  %v1190_v62 = vsub.f32 %v1188_v4, %v1189_v19 }
 0x32e   : > { %v1226_v15 = vadd.f32 %v1513_v49, %v1225_v10 }
 0x330   : > { %v1230_v47 = vsel %vm1229_vm10, %v1513_v49, %v1226_v15 }
 0x331   : > { %v1235_v28 = vsel %vm1232_vm11, %v1234_v37, %v1230_v47 }
 0x332   : > { %v1236_v8 = vmul.f32 %v1235_v28, %v1190_v62 }
 0x334   : > { %v1237_v51 = vmax.f32 %v1236_v8, 1e-10 }
 0x336   : > { %1514 = vrsqrt.f32 %v1237_v51  ;;  %vm1245_vm12 = vcmp.eq.f32.partialorder %v1237_v51, inf  ;;  %v1248_v1 = vand.u32 2147483648, %v1237_v51  ;;  %vm1247_vm13 = vcmp.eq.f32.partialorder %v1237_v51, 0.0 }
 0x33c   : > { %v1515_v16 = vpop.eup %1514 }
 0x33d   : > { %v1239_v22 = vmul.f32 %v1515_v16, %v1237_v51 }
 0x33f   : > { %v1240_v13 = vmul.f32 %v1515_v16, %v1239_v22 }
 0x341   : > { %v1241_v46 = vmul.f32 0.5, %v1240_v13 }
 0x343   : > { %v1242_v43 = vsub.f32 1.5, %v1241_v46 }
 0x345   : > { %v1243_v35 = vmul.f32 %v1515_v16, %v1242_v43 }
 0x347   : > { %v1244_v3 = vmul.f32 %v1243_v35, %v1237_v51 }
 0x349   : > { %v1246_v48 = vsel %vm1245_vm12, %v1237_v51, %v1244_v3 }
 0x34a   : > { %v1249_v5 = vsel %vm1247_vm13, %v1248_v1, %v1246_v48 }
 0x34b   : > { %v1256_v29 = vrot.slane %v1249_v5, 1  ;;  %v1257_v45 = vrot.slane %v1249_v5, 2  ;;  %v1258_v6 = vperm.slane %v1249_v5, 0 }
 0x34d   : > { %v1259_v39 = vperm.slane %v1256_v29, 0  ;;  %v1260_v18 = vperm.slane %v1257_v45, 0  ;;  %v1265_v30 = vsel %vm1264_vm14, %v1187_v23, %v1258_v6 }
 0x34e   : > { %1268 = vst [vmem:[%s1873_s24] sm:$0x3] %v1265_v30 }
 0x34f   : > { %v1266_v21 = vsel %vm1264_vm14, %v1251_v26, %v1259_v39  ;;  %v1267_v50 = vsel %vm1264_vm14, %v1252_v12, %v1260_v18 }
 0x350   : > { %1269 = vst [vmem:[%s1873_s24 + $0x2] sm:$0x3] %v1266_v21 }
 0x351   : > { %1270 = vst [vmem:[%s1873_s24 + $0x4] sm:$0x3] %v1267_v50 }
 0x352 PF: > { %s1405_s19 = sshll.u32 %s1614_s20, 1  ;;  %s1286_s6 = sshll.u32 %s1873_s24, 4  ;;  %s1287_s6 = int_to_ptr.vmem [resolvable:$true] %s1286_s6 }
 0x353   : > { %s1285_s7 = scalar_lea.hbm %s2677_s3, %s1405_s19  ;;  %s1272_s23 = scalar_lea.sflag [#allocation8], %s418_s13 }
 0x354   : > { %s1288_s8 = sshll.u32 %s1285_s7, 4  ;;  %s1536_s20 = scalar_lea.hbm %s2677_s3, 12  ;;  %s1289_s8 = int_to_ptr.hbm [resolvable:$true] %s1288_s8 }
 0x355   : > { %s1530_s27 = sshra.s32 %s1289_s8, 4  ;;  %s1531_s27 = int_to_ptr.hbm [resolvable:$true] %s1530_s27 }
 0x356   : > { %s1532_s28 = scalar_lea.hbm %s1531_s27, 6  ;;  %p1537_p13 = scmp.lt.s32.totalorder %s1531_s27, %s2677_s3 }
 0x357   : > { %p1533_p9 = scmp.ne.s32.totalorder %s1531_s27, %s1532_s28  ;;  %p1538_p1 = scmp.lt.s32.totalorder %s1536_s20, %s1532_s28 }
 0x359   : > { %p1534_p10 = pnand %p1533_p9, %p1747_p12  ;;  %p1539_p2 = por %p1538_p1, %p1537_p13 }
 0x35b   : > { %p1535_p11 = pneg %p1534_p10 }
 0x35d   : > { %p1540_p3 = pnand %p1539_p2, %p1535_p11 }
 0x35f   : > { %1543 = shalt.err (!%p1540_p3)
}
 0x360   : > { %s1631_s13 = smov 32   ;;  %s1632_s24 = smov 64  }
 0x361   : > { %s1633_s19 = smov 2  }
 0x362   : > { %1412 = dma.vmem_to_hbm [thread:$0]  (%p1747_p12), %s1287_s6, 96, %s1289_s8, %s1272_s23, %s1631_s13, %s1632_s24, %s1633_s19  }
 0x363 PF: > { %p1418_p4 = scmp.ge.s32.totalorder %s1626_s0, 2  ;;  %s1303_s5 = sand.u32 1, %s1590_s14  }
 0x364   : > { %s1304_s7 = scalar_lea.sflag [#allocation8], %s1303_s5 }
 0x365   : > { %p1415_p5 = pnand %p1418_p4, %p1751_p0 }
 0x367   : > { %p1416_p6 = pneg %p1415_p5 }
 0x369   : > { %1585 = dma.done.wait (%p1416_p6), %s1304_s7, 96  }
 0x36a   : > { %1587 = vsyncadd (%p1416_p6), %s1304_s7, 4294967200  ;;  %s17_s0 = sadd.s32 1, %s1626_s0   ;;  %s2692_s14 = smov %s1594_s15 }
 0x36b   : > { %p14_p7 = scmp.ge.s32.totalorder %s17_s0, 8   ;;  %s2693_s15 = smov %s1598_s16 }
 0x36c   : > { %s2694_s16 = smov %s1739_s9  ;;  %s2695_s17 = smov %s1606_s18 }
 0x36d   : > { %s2696_s18 = smov %s1742_s10  ;;  %s2697_s19 = smov %s1618_s21 }
 0x36e   : > { %s2698_s20 = smov %s1622_s22  ;;  %s2699_s21 = smov %s2702_s25 }
 0x36f   : > { %s2700_s22 = smov %s2706_s26  ;;  %16 = sbr.rel (!%p14_p7) target bundleno = 8 (0x8), region = 125 }
 0x374   :  { %1310 = vsyncpa [#allocation8], 1 }
 0x375   :  { %1312 = vsyncpa [#allocation8 + $0x1], 1 }

</bundles_post_ra>
